<compile_context>
chip_gen: v7x
topology: tpu7x:2x2x1
jax: 0.10.0
libtpu: 0.0.40
codegen_flags: <defaults>
</compile_context>

<pallas_src>
import functools

import jax
import jax.numpy as jnp
from jax import lax
from jax.experimental import pallas as pl
from jax.experimental.pallas import tpu as pltpu


# ----------------------------------------------------------------------------
# Fused kernel: num_layers x SelectiveSSM -> mean pool over L -> MLP classifier
# One grid step == one tile of Bt sequences (batch axis is "parallel").
# ----------------------------------------------------------------------------
def mamba_fused_kernel(x_ref, a_ref, b_ref, c_ref, dt_ref, cw_ref, cb_ref,
                       w1_ref, b1_ref, w2_ref, b2_ref, o_ref,
                       xb_scr, h_scr, ypad_scr):
    # Per-grid-step shapes:
    #   x_ref : (L*Bt, D) f32 time-major    a_ref : (N, S, S) bf16
    #   b_ref : (N, D, S) bf16              c_ref : (N, S, D) bf16
    #   dt_ref: (N, 1, D) f32               cw_ref: (N, K, D, D) bf16 (w[:,:,k].T)
    #   cb_ref: (N, 1, D) f32               w1/w2 : bf16, b1/b2 : f32
    #   o_ref : (Bt, C) f32
    LB, D = x_ref.shape
    N, S, _ = a_ref.shape
    K = cw_ref.shape[1]
    Bt = o_ref.shape[0]
    L = LB // Bt
    pad = K - 1
    f32, bf16 = jnp.float32, jnp.bfloat16

    # Zero left padding for the causal conv (rows [0, pad*Bt) never rewritten).
    ypad_scr[0:pad * Bt, :] = jnp.zeros((pad * Bt, D), f32)

    x = x_ref[...]                                            # (L*Bt, D) f32

    for i in range(N):                                        # static layer loop
        a_i = a_ref[i]                                        # (S, S) bf16
        dt_sig = jax.nn.sigmoid(dt_ref[i])                    # (1, D) f32

        # -- hoisted input projection: one bulk matmul off the serial path ----
        xb_scr[...] = jnp.dot(x.astype(bf16), b_ref[i],
                              preferred_element_type=f32)     # (L*Bt, S)

        # -- serial recurrence: (Bt,S)@(S,S) bf16 MXU + tanh per timestep -----
        def step(t, h):
            off = pl.multiple_of(t * Bt, Bt)                  # aligned 8-row slab
            h = jnp.tanh(
                jnp.dot(h.astype(bf16), a_i, preferred_element_type=f32)
                + xb_scr[pl.ds(off, Bt), :])
            h_scr[pl.ds(off, Bt), :] = h
            return h

        lax.fori_loop(0, L, step, jnp.zeros((Bt, S), f32),
                      unroll=min(L, 8))

        # -- bulk output projection + dt gate ----------------------------------
        y = jnp.dot(h_scr[...].astype(bf16), c_ref[i],
                    preferred_element_type=f32) * dt_sig      # (L*Bt, D) f32
        ypad_scr[pad * Bt:(pad + L) * Bt, :] = y

        # -- causal conv1d(k=K): K bulk matmuls over shifted aligned windows --
        # out[t] = sum_k  y[t - (K-1-k)] @ W[k]  + bias
        acc = jnp.dot(ypad_scr[0:L * Bt, :].astype(bf16), cw_ref[i, 0],
                      preferred_element_type=f32)
        for k in range(1, K):
            acc = acc + jnp.dot(
                ypad_scr[k * Bt:(k + L) * Bt, :].astype(bf16), cw_ref[i, k],
                preferred_element_type=f32)
        x = acc + cb_ref[i]                                   # (L*Bt, D) f32
        # TODO(synk): nn.Dropout after the conv is identity (eval semantics).

    # -- mean pool over time + 2-layer MLP classifier --------------------------
    pooled = jnp.sum(x.reshape(L, Bt, D), axis=0) * (1.0 / L)  # (Bt, D)
    h1 = jnp.dot(pooled.astype(bf16), w1_ref[...],
                 preferred_element_type=f32) + b1_ref[...]
    h1 = jnp.maximum(h1, 0.0)                                  # ReLU (Dropout=id)
    o_ref[...] = jnp.dot(h1.astype(bf16), w2_ref[...],
                         preferred_element_type=f32) + b2_ref[...]


# ----------------------------------------------------------------------------
# Wrapper: embedding gather + batch-tile layout in JAX, one pallas_call
# ----------------------------------------------------------------------------
def mamba_classifier_forward(params, tokens, block_batch=8):
    emb = jnp.take(params["embedding"], tokens, axis=0)       # (B, L, D) f32
    Bsz, L, D = emb.shape
    N, S, _ = params["A_all"].shape
    K = params["conv_w_all"].shape[1]
    H = params["W1"].shape[1]
    C = params["W2"].shape[1]

    # Pad batch to a multiple of the batch tile (Bt >= 8 sublanes per step).
    # TODO(synk): for v7x megacore, prefer a padded grid with an even number of
    # tiles when batch size allows, so both TensorCores stay busy.
    Bt = block_batch
    B_pad = ((Bsz + Bt - 1) // Bt) * Bt
    if B_pad != Bsz:
        emb = jnp.concatenate(
            [emb, jnp.zeros((B_pad - Bsz, L, D), emb.dtype)], axis=0)
    nb = B_pad // Bt
    # Time-major layout within each tile: row t*Bt + j == (seq j of tile, time t).
    x2d = emb.reshape(nb, Bt, L, D).transpose(0, 2, 1, 3).reshape(nb, L * Bt, D)

    bf16 = jnp.bfloat16
    a_all = params["A_all"].astype(bf16)
    b_all = params["B_all"].astype(bf16)
    c_all = params["C_all"].astype(bf16)
    cw_all = params["conv_w_all"].astype(bf16)
    w1 = params["W1"].astype(bf16)
    w2 = params["W2"].astype(bf16)

    def full(shape):                      # whole-array block, same for every b
        return pl.BlockSpec(shape, lambda b, _n=len(shape): (0,) * _n)

    flops_per_seq = (N * (2 * L * D * S + 2 * L * S * S + 2 * L * S * D
                          + K * 2 * L * D * D) + 2 * D * H + 2 * H * C)
    transc_per_seq = N * (L * S + D)
    bytes_acc = (4 * x2d.size + 2 * a_all.size + 2 * b_all.size
                 + 2 * c_all.size + 4 * params["dt_all"].size + 2 * cw_all.size
                 + 4 * params["conv_b_all"].size + 2 * w1.size
                 + 4 * params["b1"].size + 2 * w2.size + 4 * params["b2"].size
                 + 4 * B_pad * C)

    out = pl.pallas_call(
        mamba_fused_kernel,
        out_shape=jax.ShapeDtypeStruct((B_pad, C), jnp.float32),
        grid=(nb,),
        in_specs=[
            pl.BlockSpec((None, L * Bt, D), lambda b: (b, 0, 0)),  # activations
            full((N, S, S)),            # A (bf16)
            full((N, D, S)),            # B
            full((N, S, D)),            # C
            full((N, 1, D)),            # dt
            full((N, K, D, D)),         # conv weights
            full((N, 1, D)),            # conv bias
            full((D, H)),               # W1
            full((1, H)),               # b1
            full((H, C)),               # W2
            full((1, C)),               # b2
        ],
        out_specs=pl.BlockSpec((Bt, C), lambda b: (b, 0)),
        scratch_shapes=[
            pltpu.VMEM((L * Bt, S), jnp.float32),            # hoisted x @ B
            pltpu.VMEM((L * Bt, S), jnp.float32),            # recurrence states H
            pltpu.VMEM(((L + K - 1) * Bt, D), jnp.float32),  # zero-left-pad gated Y
        ],
        compiler_params=pltpu.CompilerParams(
            dimension_semantics=("parallel",)),
        cost_estimate=pl.CostEstimate(
            flops=B_pad * flops_per_seq,
            transcendentals=B_pad * transc_per_seq,
            bytes_accessed=bytes_acc),
        # TODO(synk): at production sizes (D>=512, N>=12) stream per-layer
        # weights via a layer grid axis / emit_pipeline to stay under v7x's
        # 64 MiB VMEM instead of keeping all layers resident.
    )(x2d, a_all, b_all, c_all, params["dt_all"], cw_all,
      params["conv_b_all"], w1, params["b1"], w2, params["b2"])
    return out[:Bsz, :]


# ----------------------------------------------------------------------------
# Parameter init (deterministic, synthetic), pure-JAX reference, main
# ----------------------------------------------------------------------------
def init_params(key, vocab_size, d_model, d_state, num_layers, num_classes,
                kernel_size=3):
    keys = jax.random.split(key, num_layers + 2)
    A, Bm, C, dt, cw, cb = [], [], [], [], [], []
    for i in range(num_layers):
        lk = jax.random.split(keys[1 + i], 6)
        A.append(jax.random.normal(lk[0], (d_state, d_state), jnp.float32))
        Bm.append(jax.random.normal(lk[1], (d_model, d_state), jnp.float32))
        C.append(jax.random.normal(lk[2], (d_state, d_model), jnp.float32))
        dt.append(jax.random.normal(lk[3], (d_model,), jnp.float32))
        # (K, D_in, D_out) == pytorch Conv1d weight[:, :, k].T
        cw.append(0.1 * jax.random.normal(
            lk[4], (kernel_size, d_model, d_model), jnp.float32))
        cb.append(0.1 * jax.random.normal(lk[5], (d_model,), jnp.float32))
    ck = jax.random.split(keys[-1], 4)
    d_hidden = 2 * d_model
    return {
        "embedding": jax.random.normal(keys[0], (vocab_size, d_model),
                                       jnp.float32),
        "A_all": jnp.stack(A),                               # (N, S, S)
        "B_all": jnp.stack(Bm),                              # (N, D, S)
        "C_all": jnp.stack(C),                               # (N, S, D)
        "dt_all": jnp.stack(dt)[:, None, :],                 # (N, 1, D)
        "conv_w_all": jnp.stack(cw),                         # (N, K, D, D)
        "conv_b_all": jnp.stack(cb)[:, None, :],             # (N, 1, D)
        "W1": 0.05 * jax.random.normal(ck[0], (d_model, d_hidden), jnp.float32),
        "b1": 0.05 * jax.random.normal(ck[1], (1, d_hidden), jnp.float32),
        "W2": 0.05 * jax.random.normal(ck[2], (d_hidden, num_classes),
                                       jnp.float32),
        "b2": 0.05 * jax.random.normal(ck[3], (1, num_classes), jnp.float32),
    }


def reference_forward(params, tokens):
    """Pure-JAX f32 reference matching the PyTorch module semantics."""
    x = jnp.take(params["embedding"], tokens, axis=0)        # (B, L, D)
    N = params["A_all"].shape[0]
    K = params["conv_w_all"].shape[1]
    Bsz, L, D = x.shape
    for i in range(N):
        A = params["A_all"][i]
        Bm = params["B_all"][i]
        C = params["C_all"][i]
        dt = params["dt_all"][i, 0]
        W = params["conv_w_all"][i]
        cb = params["conv_b_all"][i, 0]
        h = jnp.zeros((Bsz, A.shape[0]), jnp.float32)
        ys = []
        for t in range(L):
            h = jnp.tanh(h @ A + x[:, t, :] @ Bm)
            ys.append(h @ C)
        y = jnp.stack(ys, axis=1) * jax.nn.sigmoid(dt)[None, None, :]
        ypad = jnp.concatenate(
            [jnp.zeros((Bsz, K - 1, D), jnp.float32), y], axis=1)
        x = sum(jnp.einsum("bld,de->ble", ypad[:, k:k + L, :], W[k])
                for k in range(K)) + cb[None, None, :]
    pooled = x.mean(axis=1)
    h1 = jax.nn.relu(pooled @ params["W1"] + params["b1"])
    return h1 @ params["W2"] + params["b2"]


if __name__ == "__main__":
    vocab_size, d_model, d_state = 50, 32, 16
    num_layers, num_classes = 2, 3
    B, L = 2, 8

    key = jax.random.PRNGKey(0)
    pkey, tkey = jax.random.split(key)
    params = init_params(pkey, vocab_size, d_model, d_state,
                         num_layers, num_classes)
    tokens = jax.random.randint(tkey, (B, L), 0, vocab_size, dtype=jnp.int32)

    fwd = jax.jit(functools.partial(mamba_classifier_forward, params))
    logits = fwd(tokens)
    jax.block_until_ready(logits)

    assert logits.shape == (B, num_classes), logits.shape
    assert logits.dtype == jnp.float32

    ref = reference_forward(params, tokens)
    err = float(jnp.max(jnp.abs(logits - ref)))
    assert err < 0.15, f"max |diff| vs f32 reference = {err}"
    print("KERNEL_OK")
</pallas_src>

<mosaic_0001>
module attributes {stable_mosaic.version = 11 : i64} {
  func.func @mamba_fused_kernel(%arg0: i32, %arg1: memref<1x64x32xf32, #tpu.memory_space<vmem>>, %arg2: memref<2x16x16xbf16, #tpu.memory_space<vmem>>, %arg3: memref<2x32x16xbf16, #tpu.memory_space<vmem>>, %arg4: memref<2x16x32xbf16, #tpu.memory_space<vmem>>, %arg5: memref<2x1x32xf32, #tpu.memory_space<vmem>>, %arg6: memref<2x3x32x32xbf16, #tpu.memory_space<vmem>>, %arg7: memref<2x1x32xf32, #tpu.memory_space<vmem>>, %arg8: memref<32x64xbf16, #tpu.memory_space<vmem>>, %arg9: memref<1x64xf32, #tpu.memory_space<vmem>>, %arg10: memref<64x3xbf16, #tpu.memory_space<vmem>>, %arg11: memref<1x3xf32, #tpu.memory_space<vmem>>, %arg12: memref<8x3xf32, #tpu.memory_space<vmem>>, %arg13: memref<64x16xf32, #tpu.memory_space<vmem>>, %arg14: memref<64x16xf32, #tpu.memory_space<vmem>>, %arg15: memref<80x32xf32, #tpu.memory_space<vmem>>) attributes {dimension_semantics = [#tpu.dimension_semantics<parallel>], iteration_bounds = array<i64: 1>, scalar_prefetch = 0 : i64, scratch_operands = 3 : i64, tpu.core_type = #tpu.core_type<tc>, window_params = [{transform_indices = @transform_0, window_bounds = array<i64: 1, 64, 32>}, {pipeline_mode = #tpu.pipeline_mode<synchronous>, transform_indices = @transform_1, window_bounds = array<i64: 2, 16, 16>}, {pipeline_mode = #tpu.pipeline_mode<synchronous>, transform_indices = @transform_2, window_bounds = array<i64: 2, 32, 16>}, {pipeline_mode = #tpu.pipeline_mode<synchronous>, transform_indices = @transform_3, window_bounds = array<i64: 2, 16, 32>}, {pipeline_mode = #tpu.pipeline_mode<synchronous>, transform_indices = @transform_4, window_bounds = array<i64: 2, 1, 32>}, {pipeline_mode = #tpu.pipeline_mode<synchronous>, transform_indices = @transform_5, window_bounds = array<i64: 2, 3, 32, 32>}, {pipeline_mode = #tpu.pipeline_mode<synchronous>, transform_indices = @transform_6, window_bounds = array<i64: 2, 1, 32>}, {pipeline_mode = #tpu.pipeline_mode<synchronous>, transform_indices = @transform_7, window_bounds = array<i64: 32, 64>}, {pipeline_mode = #tpu.pipeline_mode<synchronous>, transform_indices = @transform_8, window_bounds = array<i64: 1, 64>}, {pipeline_mode = #tpu.pipeline_mode<synchronous>, transform_indices = @transform_9, window_bounds = array<i64: 64, 3>}, {pipeline_mode = #tpu.pipeline_mode<synchronous>, transform_indices = @transform_10, window_bounds = array<i64: 1, 3>}, {transform_indices = @transform_11, window_bounds = array<i64: 8, 3>}]} {
    %cst = arith.constant 0.000000e+00 : f32
    %0 = vector.broadcast %cst : f32 to vector<16x32xf32>
    %c0 = arith.constant 0 : index
    %c0_0 = arith.constant 0 : index
    %1 = vector.load %arg15[%c0, %c0_0] : memref<80x32xf32, #tpu.memory_space<vmem>>, vector<16x32xf32>
    tpu.vector_store %arg15[%c0, %c0_0], %0 {strides = array<i32>} : memref<80x32xf32, #tpu.memory_space<vmem>>, vector<16x32xf32>,
    %c0_1 = arith.constant 0 : index
    %c0_2 = arith.constant 0 : index
    %c0_3 = arith.constant 0 : index
    %2 = vector.load %arg1[%c0_1, %c0_2, %c0_3] : memref<1x64x32xf32, #tpu.memory_space<vmem>>, vector<1x64x32xf32>
    %3 = vector.shape_cast %2 : vector<1x64x32xf32> to vector<64x32xf32>
    %c0_4 = arith.constant 0 : index
    %c0_5 = arith.constant 0 : index
    %c0_6 = arith.constant 0 : index
    %4 = vector.load %arg2[%c0_4, %c0_5, %c0_6] : memref<2x16x16xbf16, #tpu.memory_space<vmem>>, vector<1x16x16xbf16>
    %5 = vector.shape_cast %4 : vector<1x16x16xbf16> to vector<16x16xbf16>
    %c0_7 = arith.constant 0 : index
    %c0_8 = arith.constant 0 : index
    %c0_9 = arith.constant 0 : index
    %6 = vector.load %arg5[%c0_7, %c0_8, %c0_9] : memref<2x1x32xf32, #tpu.memory_space<vmem>>, vector<1x1x32xf32>
    %7 = vector.shape_cast %6 : vector<1x1x32xf32> to vector<1x32xf32>
    %8 = arith.negf %7 : vector<1x32xf32>
    %9 = math.exp %8 : vector<1x32xf32>
    %cst_10 = arith.constant 1.000000e+00 : f32
    %10 = vector.broadcast %cst_10 : f32 to vector<1x32xf32>
    %11 = arith.addf %10, %9 : vector<1x32xf32>
    %12 = arith.divf %10, %11 : vector<1x32xf32>
    %13 = arith.truncf %3 : vector<64x32xf32> to vector<64x32xbf16>
    %c0_11 = arith.constant 0 : index
    %c0_12 = arith.constant 0 : index
    %c0_13 = arith.constant 0 : index
    %14 = vector.load %arg3[%c0_11, %c0_12, %c0_13] : memref<2x32x16xbf16, #tpu.memory_space<vmem>>, vector<1x32x16xbf16>
    %15 = vector.shape_cast %14 : vector<1x32x16xbf16> to vector<32x16xbf16>
    %cst_14 = arith.constant dense<0.000000e+00> : vector<64x16xf32>
    %16 = tpu.matmul %13, %15, %cst_14 {dimension_numbers = #tpu.dot_dimension_numbers<[1], [0], [0], [1], [0, 0, 1, 1], [], []>} : vector<64x32xbf16>, vector<32x16xbf16>, vector<64x16xf32> -> vector<64x16xf32>
    %c0_15 = arith.constant 0 : index
    %c0_16 = arith.constant 0 : index
    %17 = vector.load %arg13[%c0_15, %c0_16] : memref<64x16xf32, #tpu.memory_space<vmem>>, vector<64x16xf32>
    tpu.vector_store %arg13[%c0_15, %c0_16], %16 {strides = array<i32>} : memref<64x16xf32, #tpu.memory_space<vmem>>, vector<64x16xf32>,
    %cst_17 = arith.constant 0.000000e+00 : f32
    %18 = vector.broadcast %cst_17 : f32 to vector<8x16xf32>
    %c0_i32 = arith.constant 0 : i32
    %c8_i32 = arith.constant 8 : i32
    %19 = arith.muli %c0_i32, %c8_i32 : i32
    %20 = tpu.assume_multiple %19, 8 : i32
    %21 = arith.truncf %18 : vector<8x16xf32> to vector<8x16xbf16>
    %cst_18 = arith.constant dense<0.000000e+00> : vector<8x16xf32>
    %22 = tpu.matmul %21, %5, %cst_18 {dimension_numbers = #tpu.dot_dimension_numbers<[1], [0], [0], [1], [0, 0, 1, 1], [], []>} : vector<8x16xbf16>, vector<16x16xbf16>, vector<8x16xf32> -> vector<8x16xf32>
    %23 = arith.index_cast %20 : i32 to index
    %c0_19 = arith.constant 0 : index
    %24 = vector.load %arg13[%23, %c0_19] : memref<64x16xf32, #tpu.memory_space<vmem>>, vector<8x16xf32>
    %25 = arith.addf %22, %24 : vector<8x16xf32>
    %26 = math.tanh %25 : vector<8x16xf32>
    %27 = arith.index_cast %20 : i32 to index
    %c0_20 = arith.constant 0 : index
    %28 = vector.load %arg14[%27, %c0_20] : memref<64x16xf32, #tpu.memory_space<vmem>>, vector<8x16xf32>
    tpu.vector_store %arg14[%27, %c0_20], %26 {strides = array<i32>} : memref<64x16xf32, #tpu.memory_space<vmem>>, vector<8x16xf32>,
    %c1_i32 = arith.constant 1 : i32
    %c8_i32_21 = arith.constant 8 : i32
    %29 = arith.muli %c1_i32, %c8_i32_21 : i32
    %30 = tpu.assume_multiple %29, 8 : i32
    %31 = arith.truncf %26 : vector<8x16xf32> to vector<8x16xbf16>
    %cst_22 = arith.constant dense<0.000000e+00> : vector<8x16xf32>
    %32 = tpu.matmul %31, %5, %cst_22 {dimension_numbers = #tpu.dot_dimension_numbers<[1], [0], [0], [1], [0, 0, 1, 1], [], []>} : vector<8x16xbf16>, vector<16x16xbf16>, vector<8x16xf32> -> vector<8x16xf32>
    %33 = arith.index_cast %30 : i32 to index
    %c0_23 = arith.constant 0 : index
    %34 = vector.load %arg13[%33, %c0_23] : memref<64x16xf32, #tpu.memory_space<vmem>>, vector<8x16xf32>
    %35 = arith.addf %32, %34 : vector<8x16xf32>
    %36 = math.tanh %35 : vector<8x16xf32>
    %37 = arith.index_cast %30 : i32 to index
    %c0_24 = arith.constant 0 : index
    %38 = vector.load %arg14[%37, %c0_24] : memref<64x16xf32, #tpu.memory_space<vmem>>, vector<8x16xf32>
    tpu.vector_store %arg14[%37, %c0_24], %36 {strides = array<i32>} : memref<64x16xf32, #tpu.memory_space<vmem>>, vector<8x16xf32>,
    %c2_i32 = arith.constant 2 : i32
    %c8_i32_25 = arith.constant 8 : i32
    %39 = arith.muli %c2_i32, %c8_i32_25 : i32
    %40 = tpu.assume_multiple %39, 8 : i32
    %41 = arith.truncf %36 : vector<8x16xf32> to vector<8x16xbf16>
    %cst_26 = arith.constant dense<0.000000e+00> : vector<8x16xf32>
    %42 = tpu.matmul %41, %5, %cst_26 {dimension_numbers = #tpu.dot_dimension_numbers<[1], [0], [0], [1], [0, 0, 1, 1], [], []>} : vector<8x16xbf16>, vector<16x16xbf16>, vector<8x16xf32> -> vector<8x16xf32>
    %43 = arith.index_cast %40 : i32 to index
    %c0_27 = arith.constant 0 : index
    %44 = vector.load %arg13[%43, %c0_27] : memref<64x16xf32, #tpu.memory_space<vmem>>, vector<8x16xf32>
    %45 = arith.addf %42, %44 : vector<8x16xf32>
    %46 = math.tanh %45 : vector<8x16xf32>
    %47 = arith.index_cast %40 : i32 to index
    %c0_28 = arith.constant 0 : index
    %48 = vector.load %arg14[%47, %c0_28] : memref<64x16xf32, #tpu.memory_space<vmem>>, vector<8x16xf32>
    tpu.vector_store %arg14[%47, %c0_28], %46 {strides = array<i32>} : memref<64x16xf32, #tpu.memory_space<vmem>>, vector<8x16xf32>,
    %c3_i32 = arith.constant 3 : i32
    %c8_i32_29 = arith.constant 8 : i32
    %49 = arith.muli %c3_i32, %c8_i32_29 : i32
    %50 = tpu.assume_multiple %49, 8 : i32
    %51 = arith.truncf %46 : vector<8x16xf32> to vector<8x16xbf16>
    %cst_30 = arith.constant dense<0.000000e+00> : vector<8x16xf32>
    %52 = tpu.matmul %51, %5, %cst_30 {dimension_numbers = #tpu.dot_dimension_numbers<[1], [0], [0], [1], [0, 0, 1, 1], [], []>} : vector<8x16xbf16>, vector<16x16xbf16>, vector<8x16xf32> -> vector<8x16xf32>
    %53 = arith.index_cast %50 : i32 to index
    %c0_31 = arith.constant 0 : index
    %54 = vector.load %arg13[%53, %c0_31] : memref<64x16xf32, #tpu.memory_space<vmem>>, vector<8x16xf32>
    %55 = arith.addf %52, %54 : vector<8x16xf32>
    %56 = math.tanh %55 : vector<8x16xf32>
    %57 = arith.index_cast %50 : i32 to index
    %c0_32 = arith.constant 0 : index
    %58 = vector.load %arg14[%57, %c0_32] : memref<64x16xf32, #tpu.memory_space<vmem>>, vector<8x16xf32>
    tpu.vector_store %arg14[%57, %c0_32], %56 {strides = array<i32>} : memref<64x16xf32, #tpu.memory_space<vmem>>, vector<8x16xf32>,
    %c4_i32 = arith.constant 4 : i32
    %c8_i32_33 = arith.constant 8 : i32
    %59 = arith.muli %c4_i32, %c8_i32_33 : i32
    %60 = tpu.assume_multiple %59, 8 : i32
    %61 = arith.truncf %56 : vector<8x16xf32> to vector<8x16xbf16>
    %cst_34 = arith.constant dense<0.000000e+00> : vector<8x16xf32>
    %62 = tpu.matmul %61, %5, %cst_34 {dimension_numbers = #tpu.dot_dimension_numbers<[1], [0], [0], [1], [0, 0, 1, 1], [], []>} : vector<8x16xbf16>, vector<16x16xbf16>, vector<8x16xf32> -> vector<8x16xf32>
    %63 = arith.index_cast %60 : i32 to index
    %c0_35 = arith.constant 0 : index
    %64 = vector.load %arg13[%63, %c0_35] : memref<64x16xf32, #tpu.memory_space<vmem>>, vector<8x16xf32>
    %65 = arith.addf %62, %64 : vector<8x16xf32>
    %66 = math.tanh %65 : vector<8x16xf32>
    %67 = arith.index_cast %60 : i32 to index
    %c0_36 = arith.constant 0 : index
    %68 = vector.load %arg14[%67, %c0_36] : memref<64x16xf32, #tpu.memory_space<vmem>>, vector<8x16xf32>
    tpu.vector_store %arg14[%67, %c0_36], %66 {strides = array<i32>} : memref<64x16xf32, #tpu.memory_space<vmem>>, vector<8x16xf32>,
    %c5_i32 = arith.constant 5 : i32
    %c8_i32_37 = arith.constant 8 : i32
    %69 = arith.muli %c5_i32, %c8_i32_37 : i32
    %70 = tpu.assume_multiple %69, 8 : i32
    %71 = arith.truncf %66 : vector<8x16xf32> to vector<8x16xbf16>
    %cst_38 = arith.constant dense<0.000000e+00> : vector<8x16xf32>
    %72 = tpu.matmul %71, %5, %cst_38 {dimension_numbers = #tpu.dot_dimension_numbers<[1], [0], [0], [1], [0, 0, 1, 1], [], []>} : vector<8x16xbf16>, vector<16x16xbf16>, vector<8x16xf32> -> vector<8x16xf32>
    %73 = arith.index_cast %70 : i32 to index
    %c0_39 = arith.constant 0 : index
    %74 = vector.load %arg13[%73, %c0_39] : memref<64x16xf32, #tpu.memory_space<vmem>>, vector<8x16xf32>
    %75 = arith.addf %72, %74 : vector<8x16xf32>
    %76 = math.tanh %75 : vector<8x16xf32>
    %77 = arith.index_cast %70 : i32 to index
    %c0_40 = arith.constant 0 : index
    %78 = vector.load %arg14[%77, %c0_40] : memref<64x16xf32, #tpu.memory_space<vmem>>, vector<8x16xf32>
    tpu.vector_store %arg14[%77, %c0_40], %76 {strides = array<i32>} : memref<64x16xf32, #tpu.memory_space<vmem>>, vector<8x16xf32>,
    %c6_i32 = arith.constant 6 : i32
    %c8_i32_41 = arith.constant 8 : i32
    %79 = arith.muli %c6_i32, %c8_i32_41 : i32
    %80 = tpu.assume_multiple %79, 8 : i32
    %81 = arith.truncf %76 : vector<8x16xf32> to vector<8x16xbf16>
    %cst_42 = arith.constant dense<0.000000e+00> : vector<8x16xf32>
    %82 = tpu.matmul %81, %5, %cst_42 {dimension_numbers = #tpu.dot_dimension_numbers<[1], [0], [0], [1], [0, 0, 1, 1], [], []>} : vector<8x16xbf16>, vector<16x16xbf16>, vector<8x16xf32> -> vector<8x16xf32>
    %83 = arith.index_cast %80 : i32 to index
    %c0_43 = arith.constant 0 : index
    %84 = vector.load %arg13[%83, %c0_43] : memref<64x16xf32, #tpu.memory_space<vmem>>, vector<8x16xf32>
    %85 = arith.addf %82, %84 : vector<8x16xf32>
    %86 = math.tanh %85 : vector<8x16xf32>
    %87 = arith.index_cast %80 : i32 to index
    %c0_44 = arith.constant 0 : index
    %88 = vector.load %arg14[%87, %c0_44] : memref<64x16xf32, #tpu.memory_space<vmem>>, vector<8x16xf32>
    tpu.vector_store %arg14[%87, %c0_44], %86 {strides = array<i32>} : memref<64x16xf32, #tpu.memory_space<vmem>>, vector<8x16xf32>,
    %c7_i32 = arith.constant 7 : i32
    %c8_i32_45 = arith.constant 8 : i32
    %89 = arith.muli %c7_i32, %c8_i32_45 : i32
    %90 = tpu.assume_multiple %89, 8 : i32
    %91 = arith.truncf %86 : vector<8x16xf32> to vector<8x16xbf16>
    %cst_46 = arith.constant dense<0.000000e+00> : vector<8x16xf32>
    %92 = tpu.matmul %91, %5, %cst_46 {dimension_numbers = #tpu.dot_dimension_numbers<[1], [0], [0], [1], [0, 0, 1, 1], [], []>} : vector<8x16xbf16>, vector<16x16xbf16>, vector<8x16xf32> -> vector<8x16xf32>
    %93 = arith.index_cast %90 : i32 to index
    %c0_47 = arith.constant 0 : index
    %94 = vector.load %arg13[%93, %c0_47] : memref<64x16xf32, #tpu.memory_space<vmem>>, vector<8x16xf32>
    %95 = arith.addf %92, %94 : vector<8x16xf32>
    %96 = math.tanh %95 : vector<8x16xf32>
    %97 = arith.index_cast %90 : i32 to index
    %c0_48 = arith.constant 0 : index
    %98 = vector.load %arg14[%97, %c0_48] : memref<64x16xf32, #tpu.memory_space<vmem>>, vector<8x16xf32>
    tpu.vector_store %arg14[%97, %c0_48], %96 {strides = array<i32>} : memref<64x16xf32, #tpu.memory_space<vmem>>, vector<8x16xf32>,
    %c8_i32_49 = arith.constant 8 : i32
    %c0_50 = arith.constant 0 : index
    %c0_51 = arith.constant 0 : index
    %99 = vector.load %arg14[%c0_50, %c0_51] : memref<64x16xf32, #tpu.memory_space<vmem>>, vector<64x16xf32>
    %100 = arith.truncf %99 : vector<64x16xf32> to vector<64x16xbf16>
    %c0_52 = arith.constant 0 : index
    %c0_53 = arith.constant 0 : index
    %c0_54 = arith.constant 0 : index
    %101 = vector.load %arg4[%c0_52, %c0_53, %c0_54] : memref<2x16x32xbf16, #tpu.memory_space<vmem>>, vector<1x16x32xbf16>
    %102 = vector.shape_cast %101 : vector<1x16x32xbf16> to vector<16x32xbf16>
    %cst_55 = arith.constant dense<0.000000e+00> : vector<64x32xf32>
    %103 = tpu.matmul %100, %102, %cst_55 {dimension_numbers = #tpu.dot_dimension_numbers<[1], [0], [0], [1], [0, 0, 1, 1], [], []>} : vector<64x16xbf16>, vector<16x32xbf16>, vector<64x32xf32> -> vector<64x32xf32>
    %104 = vector.broadcast %12 : vector<1x32xf32> to vector<64x32xf32>
    %105 = arith.mulf %103, %104 : vector<64x32xf32>
    %c16 = arith.constant 16 : index
    %c0_56 = arith.constant 0 : index
    %106 = vector.load %arg15[%c16, %c0_56] : memref<80x32xf32, #tpu.memory_space<vmem>>, vector<64x32xf32>
    tpu.vector_store %arg15[%c16, %c0_56], %105 {strides = array<i32>} : memref<80x32xf32, #tpu.memory_space<vmem>>, vector<64x32xf32>,
    %c0_57 = arith.constant 0 : index
    %c0_58 = arith.constant 0 : index
    %107 = vector.load %arg15[%c0_57, %c0_58] : memref<80x32xf32, #tpu.memory_space<vmem>>, vector<64x32xf32>
    %108 = arith.truncf %107 : vector<64x32xf32> to vector<64x32xbf16>
    %c0_59 = arith.constant 0 : index
    %c0_60 = arith.constant 0 : index
    %c0_61 = arith.constant 0 : index
    %c0_62 = arith.constant 0 : index
    %109 = vector.load %arg6[%c0_59, %c0_60, %c0_61, %c0_62] : memref<2x3x32x32xbf16, #tpu.memory_space<vmem>>, vector<1x1x32x32xbf16>
    %110 = vector.shape_cast %109 : vector<1x1x32x32xbf16> to vector<32x32xbf16>
    %cst_63 = arith.constant dense<0.000000e+00> : vector<64x32xf32>
    %111 = tpu.matmul %108, %110, %cst_63 {dimension_numbers = #tpu.dot_dimension_numbers<[1], [0], [0], [1], [0, 0, 1, 1], [], []>} : vector<64x32xbf16>, vector<32x32xbf16>, vector<64x32xf32> -> vector<64x32xf32>
    %c8 = arith.constant 8 : index
    %c0_64 = arith.constant 0 : index
    %112 = vector.load %arg15[%c8, %c0_64] : memref<80x32xf32, #tpu.memory_space<vmem>>, vector<64x32xf32>
    %113 = arith.truncf %112 : vector<64x32xf32> to vector<64x32xbf16>
    %c0_65 = arith.constant 0 : index
    %c1 = arith.constant 1 : index
    %c0_66 = arith.constant 0 : index
    %c0_67 = arith.constant 0 : index
    %114 = vector.load %arg6[%c0_65, %c1, %c0_66, %c0_67] : memref<2x3x32x32xbf16, #tpu.memory_space<vmem>>, vector<1x1x32x32xbf16>
    %115 = vector.shape_cast %114 : vector<1x1x32x32xbf16> to vector<32x32xbf16>
    %cst_68 = arith.constant dense<0.000000e+00> : vector<64x32xf32>
    %116 = tpu.matmul %113, %115, %cst_68 {dimension_numbers = #tpu.dot_dimension_numbers<[1], [0], [0], [1], [0, 0, 1, 1], [], []>} : vector<64x32xbf16>, vector<32x32xbf16>, vector<64x32xf32> -> vector<64x32xf32>
    %117 = arith.addf %111, %116 : vector<64x32xf32>
    %c16_69 = arith.constant 16 : index
    %c0_70 = arith.constant 0 : index
    %118 = vector.load %arg15[%c16_69, %c0_70] : memref<80x32xf32, #tpu.memory_space<vmem>>, vector<64x32xf32>
    %119 = arith.truncf %118 : vector<64x32xf32> to vector<64x32xbf16>
    %c0_71 = arith.constant 0 : index
    %c2 = arith.constant 2 : index
    %c0_72 = arith.constant 0 : index
    %c0_73 = arith.constant 0 : index
    %120 = vector.load %arg6[%c0_71, %c2, %c0_72, %c0_73] : memref<2x3x32x32xbf16, #tpu.memory_space<vmem>>, vector<1x1x32x32xbf16>
    %121 = vector.shape_cast %120 : vector<1x1x32x32xbf16> to vector<32x32xbf16>
    %cst_74 = arith.constant dense<0.000000e+00> : vector<64x32xf32>
    %122 = tpu.matmul %119, %121, %cst_74 {dimension_numbers = #tpu.dot_dimension_numbers<[1], [0], [0], [1], [0, 0, 1, 1], [], []>} : vector<64x32xbf16>, vector<32x32xbf16>, vector<64x32xf32> -> vector<64x32xf32>
    %123 = arith.addf %117, %122 : vector<64x32xf32>
    %c0_75 = arith.constant 0 : index
    %c0_76 = arith.constant 0 : index
    %c0_77 = arith.constant 0 : index
    %124 = vector.load %arg7[%c0_75, %c0_76, %c0_77] : memref<2x1x32xf32, #tpu.memory_space<vmem>>, vector<1x1x32xf32>
    %125 = vector.shape_cast %124 : vector<1x1x32xf32> to vector<1x32xf32>
    %126 = vector.broadcast %125 : vector<1x32xf32> to vector<64x32xf32>
    %127 = arith.addf %123, %126 : vector<64x32xf32>
    %c1_78 = arith.constant 1 : index
    %c0_79 = arith.constant 0 : index
    %c0_80 = arith.constant 0 : index
    %128 = vector.load %arg2[%c1_78, %c0_79, %c0_80] : memref<2x16x16xbf16, #tpu.memory_space<vmem>>, vector<1x16x16xbf16>
    %129 = vector.shape_cast %128 : vector<1x16x16xbf16> to vector<16x16xbf16>
    %c1_81 = arith.constant 1 : index
    %c0_82 = arith.constant 0 : index
    %c0_83 = arith.constant 0 : index
    %130 = vector.load %arg5[%c1_81, %c0_82, %c0_83] : memref<2x1x32xf32, #tpu.memory_space<vmem>>, vector<1x1x32xf32>
    %131 = vector.shape_cast %130 : vector<1x1x32xf32> to vector<1x32xf32>
    %132 = arith.negf %131 : vector<1x32xf32>
    %133 = math.exp %132 : vector<1x32xf32>
    %cst_84 = arith.constant 1.000000e+00 : f32
    %134 = vector.broadcast %cst_84 : f32 to vector<1x32xf32>
    %135 = arith.addf %134, %133 : vector<1x32xf32>
    %136 = arith.divf %134, %135 : vector<1x32xf32>
    %137 = arith.truncf %127 : vector<64x32xf32> to vector<64x32xbf16>
    %c1_85 = arith.constant 1 : index
    %c0_86 = arith.constant 0 : index
    %c0_87 = arith.constant 0 : index
    %138 = vector.load %arg3[%c1_85, %c0_86, %c0_87] : memref<2x32x16xbf16, #tpu.memory_space<vmem>>, vector<1x32x16xbf16>
    %139 = vector.shape_cast %138 : vector<1x32x16xbf16> to vector<32x16xbf16>
    %cst_88 = arith.constant dense<0.000000e+00> : vector<64x16xf32>
    %140 = tpu.matmul %137, %139, %cst_88 {dimension_numbers = #tpu.dot_dimension_numbers<[1], [0], [0], [1], [0, 0, 1, 1], [], []>} : vector<64x32xbf16>, vector<32x16xbf16>, vector<64x16xf32> -> vector<64x16xf32>
    %c0_89 = arith.constant 0 : index
    %c0_90 = arith.constant 0 : index
    %141 = vector.load %arg13[%c0_89, %c0_90] : memref<64x16xf32, #tpu.memory_space<vmem>>, vector<64x16xf32>
    tpu.vector_store %arg13[%c0_89, %c0_90], %140 {strides = array<i32>} : memref<64x16xf32, #tpu.memory_space<vmem>>, vector<64x16xf32>,
    %cst_91 = arith.constant 0.000000e+00 : f32
    %142 = vector.broadcast %cst_91 : f32 to vector<8x16xf32>
    %c0_i32_92 = arith.constant 0 : i32
    %c8_i32_93 = arith.constant 8 : i32
    %143 = arith.muli %c0_i32_92, %c8_i32_93 : i32
    %144 = tpu.assume_multiple %143, 8 : i32
    %145 = arith.truncf %142 : vector<8x16xf32> to vector<8x16xbf16>
    %cst_94 = arith.constant dense<0.000000e+00> : vector<8x16xf32>
    %146 = tpu.matmul %145, %129, %cst_94 {dimension_numbers = #tpu.dot_dimension_numbers<[1], [0], [0], [1], [0, 0, 1, 1], [], []>} : vector<8x16xbf16>, vector<16x16xbf16>, vector<8x16xf32> -> vector<8x16xf32>
    %147 = arith.index_cast %144 : i32 to index
    %c0_95 = arith.constant 0 : index
    %148 = vector.load %arg13[%147, %c0_95] : memref<64x16xf32, #tpu.memory_space<vmem>>, vector<8x16xf32>
    %149 = arith.addf %146, %148 : vector<8x16xf32>
    %150 = math.tanh %149 : vector<8x16xf32>
    %151 = arith.index_cast %144 : i32 to index
    %c0_96 = arith.constant 0 : index
    %152 = vector.load %arg14[%151, %c0_96] : memref<64x16xf32, #tpu.memory_space<vmem>>, vector<8x16xf32>
    tpu.vector_store %arg14[%151, %c0_96], %150 {strides = array<i32>} : memref<64x16xf32, #tpu.memory_space<vmem>>, vector<8x16xf32>,
    %c1_i32_97 = arith.constant 1 : i32
    %c8_i32_98 = arith.constant 8 : i32
    %153 = arith.muli %c1_i32_97, %c8_i32_98 : i32
    %154 = tpu.assume_multiple %153, 8 : i32
    %155 = arith.truncf %150 : vector<8x16xf32> to vector<8x16xbf16>
    %cst_99 = arith.constant dense<0.000000e+00> : vector<8x16xf32>
    %156 = tpu.matmul %155, %129, %cst_99 {dimension_numbers = #tpu.dot_dimension_numbers<[1], [0], [0], [1], [0, 0, 1, 1], [], []>} : vector<8x16xbf16>, vector<16x16xbf16>, vector<8x16xf32> -> vector<8x16xf32>
    %157 = arith.index_cast %154 : i32 to index
    %c0_100 = arith.constant 0 : index
    %158 = vector.load %arg13[%157, %c0_100] : memref<64x16xf32, #tpu.memory_space<vmem>>, vector<8x16xf32>
    %159 = arith.addf %156, %158 : vector<8x16xf32>
    %160 = math.tanh %159 : vector<8x16xf32>
    %161 = arith.index_cast %154 : i32 to index
    %c0_101 = arith.constant 0 : index
    %162 = vector.load %arg14[%161, %c0_101] : memref<64x16xf32, #tpu.memory_space<vmem>>, vector<8x16xf32>
    tpu.vector_store %arg14[%161, %c0_101], %160 {strides = array<i32>} : memref<64x16xf32, #tpu.memory_space<vmem>>, vector<8x16xf32>,
    %c2_i32_102 = arith.constant 2 : i32
    %c8_i32_103 = arith.constant 8 : i32
    %163 = arith.muli %c2_i32_102, %c8_i32_103 : i32
    %164 = tpu.assume_multiple %163, 8 : i32
    %165 = arith.truncf %160 : vector<8x16xf32> to vector<8x16xbf16>
    %cst_104 = arith.constant dense<0.000000e+00> : vector<8x16xf32>
    %166 = tpu.matmul %165, %129, %cst_104 {dimension_numbers = #tpu.dot_dimension_numbers<[1], [0], [0], [1], [0, 0, 1, 1], [], []>} : vector<8x16xbf16>, vector<16x16xbf16>, vector<8x16xf32> -> vector<8x16xf32>
    %167 = arith.index_cast %164 : i32 to index
    %c0_105 = arith.constant 0 : index
    %168 = vector.load %arg13[%167, %c0_105] : memref<64x16xf32, #tpu.memory_space<vmem>>, vector<8x16xf32>
    %169 = arith.addf %166, %168 : vector<8x16xf32>
    %170 = math.tanh %169 : vector<8x16xf32>
    %171 = arith.index_cast %164 : i32 to index
    %c0_106 = arith.constant 0 : index
    %172 = vector.load %arg14[%171, %c0_106] : memref<64x16xf32, #tpu.memory_space<vmem>>, vector<8x16xf32>
    tpu.vector_store %arg14[%171, %c0_106], %170 {strides = array<i32>} : memref<64x16xf32, #tpu.memory_space<vmem>>, vector<8x16xf32>,
    %c3_i32_107 = arith.constant 3 : i32
    %c8_i32_108 = arith.constant 8 : i32
    %173 = arith.muli %c3_i32_107, %c8_i32_108 : i32
    %174 = tpu.assume_multiple %173, 8 : i32
    %175 = arith.truncf %170 : vector<8x16xf32> to vector<8x16xbf16>
    %cst_109 = arith.constant dense<0.000000e+00> : vector<8x16xf32>
    %176 = tpu.matmul %175, %129, %cst_109 {dimension_numbers = #tpu.dot_dimension_numbers<[1], [0], [0], [1], [0, 0, 1, 1], [], []>} : vector<8x16xbf16>, vector<16x16xbf16>, vector<8x16xf32> -> vector<8x16xf32>
    %177 = arith.index_cast %174 : i32 to index
    %c0_110 = arith.constant 0 : index
    %178 = vector.load %arg13[%177, %c0_110] : memref<64x16xf32, #tpu.memory_space<vmem>>, vector<8x16xf32>
    %179 = arith.addf %176, %178 : vector<8x16xf32>
    %180 = math.tanh %179 : vector<8x16xf32>
    %181 = arith.index_cast %174 : i32 to index
    %c0_111 = arith.constant 0 : index
    %182 = vector.load %arg14[%181, %c0_111] : memref<64x16xf32, #tpu.memory_space<vmem>>, vector<8x16xf32>
    tpu.vector_store %arg14[%181, %c0_111], %180 {strides = array<i32>} : memref<64x16xf32, #tpu.memory_space<vmem>>, vector<8x16xf32>,
    %c4_i32_112 = arith.constant 4 : i32
    %c8_i32_113 = arith.constant 8 : i32
    %183 = arith.muli %c4_i32_112, %c8_i32_113 : i32
    %184 = tpu.assume_multiple %183, 8 : i32
    %185 = arith.truncf %180 : vector<8x16xf32> to vector<8x16xbf16>
    %cst_114 = arith.constant dense<0.000000e+00> : vector<8x16xf32>
    %186 = tpu.matmul %185, %129, %cst_114 {dimension_numbers = #tpu.dot_dimension_numbers<[1], [0], [0], [1], [0, 0, 1, 1], [], []>} : vector<8x16xbf16>, vector<16x16xbf16>, vector<8x16xf32> -> vector<8x16xf32>
    %187 = arith.index_cast %184 : i32 to index
    %c0_115 = arith.constant 0 : index
    %188 = vector.load %arg13[%187, %c0_115] : memref<64x16xf32, #tpu.memory_space<vmem>>, vector<8x16xf32>
    %189 = arith.addf %186, %188 : vector<8x16xf32>
    %190 = math.tanh %189 : vector<8x16xf32>
    %191 = arith.index_cast %184 : i32 to index
    %c0_116 = arith.constant 0 : index
    %192 = vector.load %arg14[%191, %c0_116] : memref<64x16xf32, #tpu.memory_space<vmem>>, vector<8x16xf32>
    tpu.vector_store %arg14[%191, %c0_116], %190 {strides = array<i32>} : memref<64x16xf32, #tpu.memory_space<vmem>>, vector<8x16xf32>,
    %c5_i32_117 = arith.constant 5 : i32
    %c8_i32_118 = arith.constant 8 : i32
    %193 = arith.muli %c5_i32_117, %c8_i32_118 : i32
    %194 = tpu.assume_multiple %193, 8 : i32
    %195 = arith.truncf %190 : vector<8x16xf32> to vector<8x16xbf16>
    %cst_119 = arith.constant dense<0.000000e+00> : vector<8x16xf32>
    %196 = tpu.matmul %195, %129, %cst_119 {dimension_numbers = #tpu.dot_dimension_numbers<[1], [0], [0], [1], [0, 0, 1, 1], [], []>} : vector<8x16xbf16>, vector<16x16xbf16>, vector<8x16xf32> -> vector<8x16xf32>
    %197 = arith.index_cast %194 : i32 to index
    %c0_120 = arith.constant 0 : index
    %198 = vector.load %arg13[%197, %c0_120] : memref<64x16xf32, #tpu.memory_space<vmem>>, vector<8x16xf32>
    %199 = arith.addf %196, %198 : vector<8x16xf32>
    %200 = math.tanh %199 : vector<8x16xf32>
    %201 = arith.index_cast %194 : i32 to index
    %c0_121 = arith.constant 0 : index
    %202 = vector.load %arg14[%201, %c0_121] : memref<64x16xf32, #tpu.memory_space<vmem>>, vector<8x16xf32>
    tpu.vector_store %arg14[%201, %c0_121], %200 {strides = array<i32>} : memref<64x16xf32, #tpu.memory_space<vmem>>, vector<8x16xf32>,
    %c6_i32_122 = arith.constant 6 : i32
    %c8_i32_123 = arith.constant 8 : i32
    %203 = arith.muli %c6_i32_122, %c8_i32_123 : i32
    %204 = tpu.assume_multiple %203, 8 : i32
    %205 = arith.truncf %200 : vector<8x16xf32> to vector<8x16xbf16>
    %cst_124 = arith.constant dense<0.000000e+00> : vector<8x16xf32>
    %206 = tpu.matmul %205, %129, %cst_124 {dimension_numbers = #tpu.dot_dimension_numbers<[1], [0], [0], [1], [0, 0, 1, 1], [], []>} : vector<8x16xbf16>, vector<16x16xbf16>, vector<8x16xf32> -> vector<8x16xf32>
    %207 = arith.index_cast %204 : i32 to index
    %c0_125 = arith.constant 0 : index
    %208 = vector.load %arg13[%207, %c0_125] : memref<64x16xf32, #tpu.memory_space<vmem>>, vector<8x16xf32>
    %209 = arith.addf %206, %208 : vector<8x16xf32>
    %210 = math.tanh %209 : vector<8x16xf32>
    %211 = arith.index_cast %204 : i32 to index
    %c0_126 = arith.constant 0 : index
    %212 = vector.load %arg14[%211, %c0_126] : memref<64x16xf32, #tpu.memory_space<vmem>>, vector<8x16xf32>
    tpu.vector_store %arg14[%211, %c0_126], %210 {strides = array<i32>} : memref<64x16xf32, #tpu.memory_space<vmem>>, vector<8x16xf32>,
    %c7_i32_127 = arith.constant 7 : i32
    %c8_i32_128 = arith.constant 8 : i32
    %213 = arith.muli %c7_i32_127, %c8_i32_128 : i32
    %214 = tpu.assume_multiple %213, 8 : i32
    %215 = arith.truncf %210 : vector<8x16xf32> to vector<8x16xbf16>
    %cst_129 = arith.constant dense<0.000000e+00> : vector<8x16xf32>
    %216 = tpu.matmul %215, %129, %cst_129 {dimension_numbers = #tpu.dot_dimension_numbers<[1], [0], [0], [1], [0, 0, 1, 1], [], []>} : vector<8x16xbf16>, vector<16x16xbf16>, vector<8x16xf32> -> vector<8x16xf32>
    %217 = arith.index_cast %214 : i32 to index
    %c0_130 = arith.constant 0 : index
    %218 = vector.load %arg13[%217, %c0_130] : memref<64x16xf32, #tpu.memory_space<vmem>>, vector<8x16xf32>
    %219 = arith.addf %216, %218 : vector<8x16xf32>
    %220 = math.tanh %219 : vector<8x16xf32>
    %221 = arith.index_cast %214 : i32 to index
    %c0_131 = arith.constant 0 : index
    %222 = vector.load %arg14[%221, %c0_131] : memref<64x16xf32, #tpu.memory_space<vmem>>, vector<8x16xf32>
    tpu.vector_store %arg14[%221, %c0_131], %220 {strides = array<i32>} : memref<64x16xf32, #tpu.memory_space<vmem>>, vector<8x16xf32>,
    %c8_i32_132 = arith.constant 8 : i32
    %c0_133 = arith.constant 0 : index
    %c0_134 = arith.constant 0 : index
    %223 = vector.load %arg14[%c0_133, %c0_134] : memref<64x16xf32, #tpu.memory_space<vmem>>, vector<64x16xf32>
    %224 = arith.truncf %223 : vector<64x16xf32> to vector<64x16xbf16>
    %c1_135 = arith.constant 1 : index
    %c0_136 = arith.constant 0 : index
    %c0_137 = arith.constant 0 : index
    %225 = vector.load %arg4[%c1_135, %c0_136, %c0_137] : memref<2x16x32xbf16, #tpu.memory_space<vmem>>, vector<1x16x32xbf16>
    %226 = vector.shape_cast %225 : vector<1x16x32xbf16> to vector<16x32xbf16>
    %cst_138 = arith.constant dense<0.000000e+00> : vector<64x32xf32>
    %227 = tpu.matmul %224, %226, %cst_138 {dimension_numbers = #tpu.dot_dimension_numbers<[1], [0], [0], [1], [0, 0, 1, 1], [], []>} : vector<64x16xbf16>, vector<16x32xbf16>, vector<64x32xf32> -> vector<64x32xf32>
    %228 = vector.broadcast %136 : vector<1x32xf32> to vector<64x32xf32>
    %229 = arith.mulf %227, %228 : vector<64x32xf32>
    %c16_139 = arith.constant 16 : index
    %c0_140 = arith.constant 0 : index
    %230 = vector.load %arg15[%c16_139, %c0_140] : memref<80x32xf32, #tpu.memory_space<vmem>>, vector<64x32xf32>
    tpu.vector_store %arg15[%c16_139, %c0_140], %229 {strides = array<i32>} : memref<80x32xf32, #tpu.memory_space<vmem>>, vector<64x32xf32>,
    %c0_141 = arith.constant 0 : index
    %c0_142 = arith.constant 0 : index
    %231 = vector.load %arg15[%c0_141, %c0_142] : memref<80x32xf32, #tpu.memory_space<vmem>>, vector<64x32xf32>
    %232 = arith.truncf %231 : vector<64x32xf32> to vector<64x32xbf16>
    %c1_143 = arith.constant 1 : index
    %c0_144 = arith.constant 0 : index
    %c0_145 = arith.constant 0 : index
    %c0_146 = arith.constant 0 : index
    %233 = vector.load %arg6[%c1_143, %c0_144, %c0_145, %c0_146] : memref<2x3x32x32xbf16, #tpu.memory_space<vmem>>, vector<1x1x32x32xbf16>
    %234 = vector.shape_cast %233 : vector<1x1x32x32xbf16> to vector<32x32xbf16>
    %cst_147 = arith.constant dense<0.000000e+00> : vector<64x32xf32>
    %235 = tpu.matmul %232, %234, %cst_147 {dimension_numbers = #tpu.dot_dimension_numbers<[1], [0], [0], [1], [0, 0, 1, 1], [], []>} : vector<64x32xbf16>, vector<32x32xbf16>, vector<64x32xf32> -> vector<64x32xf32>
    %c8_148 = arith.constant 8 : index
    %c0_149 = arith.constant 0 : index
    %236 = vector.load %arg15[%c8_148, %c0_149] : memref<80x32xf32, #tpu.memory_space<vmem>>, vector<64x32xf32>
    %237 = arith.truncf %236 : vector<64x32xf32> to vector<64x32xbf16>
    %c1_150 = arith.constant 1 : index
    %c1_151 = arith.constant 1 : index
    %c0_152 = arith.constant 0 : index
    %c0_153 = arith.constant 0 : index
    %238 = vector.load %arg6[%c1_150, %c1_151, %c0_152, %c0_153] : memref<2x3x32x32xbf16, #tpu.memory_space<vmem>>, vector<1x1x32x32xbf16>
    %239 = vector.shape_cast %238 : vector<1x1x32x32xbf16> to vector<32x32xbf16>
    %cst_154 = arith.constant dense<0.000000e+00> : vector<64x32xf32>
    %240 = tpu.matmul %237, %239, %cst_154 {dimension_numbers = #tpu.dot_dimension_numbers<[1], [0], [0], [1], [0, 0, 1, 1], [], []>} : vector<64x32xbf16>, vector<32x32xbf16>, vector<64x32xf32> -> vector<64x32xf32>
    %241 = arith.addf %235, %240 : vector<64x32xf32>
    %c16_155 = arith.constant 16 : index
    %c0_156 = arith.constant 0 : index
    %242 = vector.load %arg15[%c16_155, %c0_156] : memref<80x32xf32, #tpu.memory_space<vmem>>, vector<64x32xf32>
    %243 = arith.truncf %242 : vector<64x32xf32> to vector<64x32xbf16>
    %c1_157 = arith.constant 1 : index
    %c2_158 = arith.constant 2 : index
    %c0_159 = arith.constant 0 : index
    %c0_160 = arith.constant 0 : index
    %244 = vector.load %arg6[%c1_157, %c2_158, %c0_159, %c0_160] : memref<2x3x32x32xbf16, #tpu.memory_space<vmem>>, vector<1x1x32x32xbf16>
    %245 = vector.shape_cast %244 : vector<1x1x32x32xbf16> to vector<32x32xbf16>
    %cst_161 = arith.constant dense<0.000000e+00> : vector<64x32xf32>
    %246 = tpu.matmul %243, %245, %cst_161 {dimension_numbers = #tpu.dot_dimension_numbers<[1], [0], [0], [1], [0, 0, 1, 1], [], []>} : vector<64x32xbf16>, vector<32x32xbf16>, vector<64x32xf32> -> vector<64x32xf32>
    %247 = arith.addf %241, %246 : vector<64x32xf32>
    %c1_162 = arith.constant 1 : index
    %c0_163 = arith.constant 0 : index
    %c0_164 = arith.constant 0 : index
    %248 = vector.load %arg7[%c1_162, %c0_163, %c0_164] : memref<2x1x32xf32, #tpu.memory_space<vmem>>, vector<1x1x32xf32>
    %249 = vector.shape_cast %248 : vector<1x1x32xf32> to vector<1x32xf32>
    %250 = vector.broadcast %249 : vector<1x32xf32> to vector<64x32xf32>
    %251 = arith.addf %247, %250 : vector<64x32xf32>
    %252 = vector.shape_cast %251 : vector<64x32xf32> to vector<8x8x32xf32>
    %cst_165 = arith.constant dense<0.000000e+00> : vector<8x32xf32>
    %253 = vector.multi_reduction <add>, %252, %cst_165 [0] : vector<8x8x32xf32> to vector<8x32xf32>
    %cst_166 = arith.constant 1.250000e-01 : f32
    %254 = vector.broadcast %cst_166 : f32 to vector<8x32xf32>
    %255 = arith.mulf %253, %254 : vector<8x32xf32>
    %256 = arith.truncf %255 : vector<8x32xf32> to vector<8x32xbf16>
    %c0_167 = arith.constant 0 : index
    %c0_168 = arith.constant 0 : index
    %257 = vector.load %arg8[%c0_167, %c0_168] : memref<32x64xbf16, #tpu.memory_space<vmem>>, vector<32x64xbf16>
    %cst_169 = arith.constant dense<0.000000e+00> : vector<8x64xf32>
    %258 = tpu.matmul %256, %257, %cst_169 {dimension_numbers = #tpu.dot_dimension_numbers<[1], [0], [0], [1], [0, 0, 1, 1], [], []>} : vector<8x32xbf16>, vector<32x64xbf16>, vector<8x64xf32> -> vector<8x64xf32>
    %c0_170 = arith.constant 0 : index
    %c0_171 = arith.constant 0 : index
    %259 = vector.load %arg9[%c0_170, %c0_171] : memref<1x64xf32, #tpu.memory_space<vmem>>, vector<1x64xf32>
    %260 = vector.broadcast %259 : vector<1x64xf32> to vector<8x64xf32>
    %261 = arith.addf %258, %260 : vector<8x64xf32>
    %cst_172 = arith.constant 0.000000e+00 : f32
    %262 = vector.broadcast %cst_172 : f32 to vector<8x64xf32>
    %263 = arith.maximumf %261, %262 : vector<8x64xf32>
    %264 = arith.truncf %263 : vector<8x64xf32> to vector<8x64xbf16>
    %c0_173 = arith.constant 0 : index
    %c0_174 = arith.constant 0 : index
    %265 = vector.load %arg10[%c0_173, %c0_174] : memref<64x3xbf16, #tpu.memory_space<vmem>>, vector<64x3xbf16>
    %cst_175 = arith.constant dense<0.000000e+00> : vector<8x3xf32>
    %266 = tpu.matmul %264, %265, %cst_175 {dimension_numbers = #tpu.dot_dimension_numbers<[1], [0], [0], [1], [0, 0, 1, 1], [], []>} : vector<8x64xbf16>, vector<64x3xbf16>, vector<8x3xf32> -> vector<8x3xf32>
    %c0_176 = arith.constant 0 : index
    %c0_177 = arith.constant 0 : index
    %267 = vector.load %arg11[%c0_176, %c0_177] : memref<1x3xf32, #tpu.memory_space<vmem>>, vector<1x3xf32>
    %268 = vector.broadcast %267 : vector<1x3xf32> to vector<8x3xf32>
    %269 = arith.addf %266, %268 : vector<8x3xf32>
    %c0_178 = arith.constant 0 : index
    %c0_179 = arith.constant 0 : index
    %270 = vector.load %arg12[%c0_178, %c0_179] : memref<8x3xf32, #tpu.memory_space<vmem>>, vector<8x3xf32>
    tpu.vector_store %arg12[%c0_178, %c0_179], %269 {strides = array<i32>} : memref<8x3xf32, #tpu.memory_space<vmem>>, vector<8x3xf32>,
    return
  }
  func.func @transform_0(%arg0: i32) -> (i32, i32, i32) {
    %c0_i32 = arith.constant 0 : i32
    %c0_i32_0 = arith.constant 0 : i32
    %c0_i32_1 = arith.constant 0 : i32
    return %arg0, %c0_i32, %c0_i32_0 : i32, i32, i32
  }
  func.func @transform_1(%arg0: i32) -> (i32, i32, i32) {
    %c0_i32 = arith.constant 0 : i32
    %c0_i32_0 = arith.constant 0 : i32
    %c0_i32_1 = arith.constant 0 : i32
    %c0_i32_2 = arith.constant 0 : i32
    return %c0_i32, %c0_i32_0, %c0_i32_1 : i32, i32, i32
  }
  func.func @transform_2(%arg0: i32) -> (i32, i32, i32) {
    %c0_i32 = arith.constant 0 : i32
    %c0_i32_0 = arith.constant 0 : i32
    %c0_i32_1 = arith.constant 0 : i32
    %c0_i32_2 = arith.constant 0 : i32
    return %c0_i32, %c0_i32_0, %c0_i32_1 : i32, i32, i32
  }
  func.func @transform_3(%arg0: i32) -> (i32, i32, i32) {
    %c0_i32 = arith.constant 0 : i32
    %c0_i32_0 = arith.constant 0 : i32
    %c0_i32_1 = arith.constant 0 : i32
    %c0_i32_2 = arith.constant 0 : i32
    return %c0_i32, %c0_i32_0, %c0_i32_1 : i32, i32, i32
  }
  func.func @transform_4(%arg0: i32) -> (i32, i32, i32) {
    %c0_i32 = arith.constant 0 : i32
    %c0_i32_0 = arith.constant 0 : i32
    %c0_i32_1 = arith.constant 0 : i32
    %c0_i32_2 = arith.constant 0 : i32
    return %c0_i32, %c0_i32_0, %c0_i32_1 : i32, i32, i32
  }
  func.func @transform_5(%arg0: i32) -> (i32, i32, i32, i32) {
    %c0_i32 = arith.constant 0 : i32
    %c0_i32_0 = arith.constant 0 : i32
    %c0_i32_1 = arith.constant 0 : i32
    %c0_i32_2 = arith.constant 0 : i32
    %c0_i32_3 = arith.constant 0 : i32
    return %c0_i32, %c0_i32_0, %c0_i32_1, %c0_i32_2 : i32, i32, i32, i32
  }
  func.func @transform_6(%arg0: i32) -> (i32, i32, i32) {
    %c0_i32 = arith.constant 0 : i32
    %c0_i32_0 = arith.constant 0 : i32
    %c0_i32_1 = arith.constant 0 : i32
    %c0_i32_2 = arith.constant 0 : i32
    return %c0_i32, %c0_i32_0, %c0_i32_1 : i32, i32, i32
  }
  func.func @transform_7(%arg0: i32) -> (i32, i32) {
    %c0_i32 = arith.constant 0 : i32
    %c0_i32_0 = arith.constant 0 : i32
    %c0_i32_1 = arith.constant 0 : i32
    return %c0_i32, %c0_i32_0 : i32, i32
  }
  func.func @transform_8(%arg0: i32) -> (i32, i32) {
    %c0_i32 = arith.constant 0 : i32
    %c0_i32_0 = arith.constant 0 : i32
    %c0_i32_1 = arith.constant 0 : i32
    return %c0_i32, %c0_i32_0 : i32, i32
  }
  func.func @transform_9(%arg0: i32) -> (i32, i32) {
    %c0_i32 = arith.constant 0 : i32
    %c0_i32_0 = arith.constant 0 : i32
    %c0_i32_1 = arith.constant 0 : i32
    return %c0_i32, %c0_i32_0 : i32, i32
  }
  func.func @transform_10(%arg0: i32) -> (i32, i32) {
    %c0_i32 = arith.constant 0 : i32
    %c0_i32_0 = arith.constant 0 : i32
    %c0_i32_1 = arith.constant 0 : i32
    return %c0_i32, %c0_i32_0 : i32, i32
  }
  func.func @transform_11(%arg0: i32) -> (i32, i32) {
    %c0_i32 = arith.constant 0 : i32
    %c0_i32_0 = arith.constant 0 : i32
    return %arg0, %c0_i32 : i32, i32
  }
}

</mosaic_0001>

<bundles_post_ra>
// kernel: mamba_classifier_forward.1
= control target key start
LH: loop header
LB: loop body
LE: loop exit
PB: predicated region body
PF: predicated region fallthrough
CT: control target
= control target key end

     0   :  { %vm39_vm0 = vcmask 261120   ;;  %v2685_v1 = vmov 0.0   ;;  %vm2686_vm1 = vmmov 0   ;;  %v2687_v10 = vmov 0   ;;  %s3082_s2 = inlined_call_operand.vmem [shape: bf16[2,32,16], index: 2, kind: input, shape index: {}]   ;;  %s3083_s0 = inlined_call_operand.vmem [shape: f32[1,64,32], index: 0, kind: input, shape index: {}]   ;;  %s3084_s1 = inlined_call_operand.vmem [shape: bf16[2,16,16], index: 1, kind: input, shape index: {}]   ;;  %s3085_s3 = inlined_call_operand.vmem [shape: bf16[2,16,32], index: 3, kind: input, shape index: {}]   ;;  %s3086_s5 = inlined_call_operand.vmem [shape: bf16[2,3,32,32], index: 5, kind: input, shape index: {}]   ;;  %s3087_s4 = inlined_call_operand.vmem [shape: f32[2,1,32], index: 4, kind: input, shape index: {}]   ;;  %s3088_s6 = inlined_call_operand.vmem [shape: f32[2,1,32], index: 6, kind: input, shape index: {}]   ;;  %s3089_s7 = inlined_call_operand.vmem [shape: bf16[32,64], index: 7, kind: input, shape index: {}]   ;;  %s3090_s9 = inlined_call_operand.vmem [shape: bf16[64,3], index: 9, kind: input, shape index: {}]   ;;  %s3091_s8 = inlined_call_operand.vmem [shape: f32[1,64], index: 8, kind: input, shape index: {}]   ;;  %s3092_s10 = inlined_call_operand.vmem [shape: f32[1,3], index: 10, kind: input, shape index: {}]   ;;  %s3093_s11 = inlined_call_operand.vmem [shape: f32[8,3], index: 11, kind: output, shape index: {}]  }
   0x1   :  { %v2619_v0 = vld [vmem:[%s3082_s2] sm:$0xff]   ;;  %2364 = vmatprep.subr.bf16.mxu1 %v2685_v1  ;;  %40 = vst.msk [vmem:[#allocation4] sm:$0xff] %vm39_vm0, %v2685_v1  ;;  %41 = vst.msk [vmem:[#allocation4 + $0x8] sm:$0xff] %vm39_vm0, %v2685_v1  ;;  %2366 = vmatprep.mubr.msk.bf16.mxu1 %vm2686_vm1, %v2685_v1  ;;  %v2620_v2 = vld [vmem:[%s3082_s2 + $0x8] sm:$0xff]   ;;  %vm156_vm2 = vcmask 130048   ;;  %vm2086_vm3 = vcmask 523264  }
   0x2   :  { %2352 = vmatprep.subr.bf16.mxu0 %v2619_v0  ;;  %v42_v3 = vld [vmem:[%s3083_s0] sm:$0xff]  ;;  %v43_v4 = vld [vmem:[%s3083_s0 + $0x8] sm:$0xff]  ;;  %v44_v5 = vld [vmem:[%s3083_s0 + $0x10] sm:$0xff]  ;;  %vm2130_vm4 = vcmask 23552  }
   0x3   :  { %2353 = vmatpush3.bf16.msra.mxu0 %v2619_v0  ;;  %v59_v6 = vpack.c.bf16 %v43_v4, %v42_v3  ;;  %v45_v7 = vld [vmem:[%s3083_s0 + $0x18] sm:$0xff]  ;;  %v2776_v8 = vld [vmem:[%s3084_s1] sm:$0xff]   ;;  %v47_v40 = vld [vmem:[%s3083_s0 + $0x28] sm:$0xff] }
   0x4   :  { %2354 = vmatprep.subr.bf16.mxu0 %v2620_v2  ;;  %v60_v9 = vpack.c.bf16 %v45_v7, %v44_v5  ;;  %2365 = vmatpush3.bf16.msra.mxu1 %v2776_v8  ;;  %v46_v39 = vld [vmem:[%s3083_s0 + $0x20] sm:$0xff]  ;;  %v48_v42 = vld [vmem:[%s3083_s0 + $0x30] sm:$0xff]  ;;  %v49_v43 = vld [vmem:[%s3083_s0 + $0x38] sm:$0xff] }
   0x5   :  { %2356 = vmatprep.mubr.msk.bf16.mxu0 %vm39_vm0, %v59_v6  ;;  %2370 = vmatprep.subr.bf16.mxu1 %v2685_v1  ;;  %v61_v41 = vpack.c.bf16 %v47_v40, %v46_v39  ;;  %v62_v44 = vpack.c.bf16 %v49_v43, %v48_v42 }
   0x7   :  { %2355 = vmatpush3.bf16.msra.mxu0 %v2620_v2  ;;  %2367 = vmatmul.mubr.bf16.vlgmr.msra.gmra.mrb[0].mxu1 %v2687_v10  ;;  %v2622_v2 = vld [vmem:[%s3085_s3] sm:$0xff]  }
   0x8   :  { %2394 = vmatprep.subr.bf16.mxu0 %v2685_v1  ;;  %2371 = vmatpush3.bf16.msra.mxu1 %v2776_v8 }
   0x9   :  { %2372 = vmatprep.mubr.msk.bf16.mxu1 %vm2686_vm1, %v2685_v1  ;;  %2376 = vmatprep.subr.bf16.mxu1 %v2685_v1 }
   0xa   :  { %2357 = vmatmul.mubr.msk.bf16.vlgmr.msra.gmra.mrb[0].mxu0 %vm39_vm0, %v60_v9 }
   0xb   :  { %2395 = vmatpush3.bf16.msra.mxu0 %v2776_v8  ;;  %2360 = vmatprep.mubr.msk.bf16.mxu0 %vm39_vm0, %v61_v41 }
   0xc   :  { %2406 = vmatprep.subr.bf16.mxu0 %v2685_v1 }
  0x12   :  { %2361 = vmatmul.mubr.msk.bf16.gmra.mrb[4].mxu0 %vm39_vm0, %v62_v44 }
  0x13   :  { %2396 = vmatprep.mubr.msk.bf16.mxu0 %vm2686_vm1, %v2685_v1 }
  0xda   :  { %v209_v11 = vpop.f32.mrb[0].mxu1 }
  0xdb   :  { %v2368_v13 = vpop.f32.mrb[1].mxu1 }
  0xdc   :  { %v212_v15 = vpop.f32.mrb[2].mxu1 }
  0xdd   :  { %v2358_v12 = vpop.f32.mrb[0].mxu0  ;;  %v2369_v17 = vpop.f32.mrb[3].mxu1 }
  0xde   :  { %159 = vst.msk [vmem:[#allocation2 + $0x10] sm:$0xff] %vm156_vm2, %v2358_v12  ;;  %v125_v14 = vpop.f32.mrb[1].mxu0 }
  0xdf   :  { %157 = vst.msk [vmem:[#allocation2] sm:$0xff] %vm156_vm2, %v125_v14  ;;  %v2359_v16 = vpop.f32.mrb[2].mxu0 }
  0xe0   :  { %160 = vst.msk [vmem:[#allocation2 + $0x18] sm:$0xff] %vm156_vm2, %v2359_v16  ;;  %v128_v18 = vpop.f32.mrb[3].mxu0 }
  0xe1   :  { %158 = vst.msk [vmem:[#allocation2 + $0x8] sm:$0xff] %vm156_vm2, %v128_v18 }
  0xe5   :  { %v268_v31 = vld [vmem:[#allocation2 + $0x10] sm:$0xff]  ;;  %v2362_v53 = vpop.f32.mrb[4].mxu0 }
  0xe6   :  { %v165_v19 = vld [vmem:[#allocation2] sm:$0xff]  ;;  %163 = vst.msk [vmem:[#allocation2 + $0x30] sm:$0xff] %vm156_vm2, %v2362_v53  ;;  %v141_v54 = vpop.f32.mrb[5].mxu0 }
  0xe7   :  { %v210_v20 = vadd.f32 %v209_v11, %v165_v19  ;;  %v317_v45 = vld [vmem:[#allocation2 + $0x18] sm:$0xff]  ;;  %161 = vst.msk [vmem:[#allocation2 + $0x20] sm:$0xff] %vm156_vm2, %v141_v54  ;;  %v2363_v55 = vpop.f32.mrb[6].mxu0 }
  0xe8   :  { %v219_v23 = vld [vmem:[#allocation2 + $0x8] sm:$0xff]  ;;  %164 = vst.msk [vmem:[#allocation2 + $0x38] sm:$0xff] %vm156_vm2, %v2363_v55  ;;  %v144_v56 = vpop.f32.mrb[7].mxu0 }
  0xe9   :  { %2645 = vtanh.f32 %v210_v20  ;;  %162 = vst.msk [vmem:[#allocation2 + $0x28] sm:$0xff] %vm156_vm2, %v144_v56 }
  0xee   :  { %v366_v57 = vld [vmem:[#allocation2 + $0x20] sm:$0xff] }
  0xef   :  { %v513_v54 = vld [vmem:[#allocation2 + $0x38] sm:$0xff] }
  0xf0   :  { %v415_v3 = vld [vmem:[#allocation2 + $0x28] sm:$0xff] }
  0xf3   :  { %v2646_v21 = vpop.eup %2645 }
  0xf4   :  { %216 = vst.msk [vmem:[#allocation3] sm:$0xff] %vm156_vm2, %v2646_v21  ;;  %v217_v22 = vpack.c.bf16 %v2646_v21, %v2646_v21  ;;  %v2623_v21 = vld [vmem:[%s3086_s5 + $0x10] sm:$0xff]  }
  0xf6   :  { %2373 = vmatmul.mubr.msk.bf16.vlgmr.msra.gmra.mrb[4].mxu1 %vm156_vm2, %v217_v22  ;;  %v52_v22 = vld [vmem:[%s3087_s4] sm:$0x1] }
  0xf7   :  { %2377 = vmatpush3.bf16.msra.mxu1 %v2776_v8  ;;  %2378 = vmatprep.mubr.msk.bf16.mxu1 %vm2686_vm1, %v2685_v1 }
  0xf8   :  { %2382 = vmatprep.subr.bf16.mxu1 %v2685_v1 }
  0xfb   :  { %v560_v13 = vld [vmem:[#allocation3] sm:$0xff] }
 0x1c9   :  { %v257_v24 = vpop.f32.mrb[4].mxu1 }
 0x1ca   :  { %v258_v25 = vadd.f32 %v257_v24, %v219_v23  ;;  %v2374_v26 = vpop.f32.mrb[5].mxu1  ;;  %v2136_v23 = vmul.f32 -1.442695, %v52_v22 }
 0x1cb   :  { %v260_v27 = vpop.f32.mrb[6].mxu1  ;;  %v658_v26 = vlaneseq }
 0x1cc   :  { %2647 = vtanh.f32 %v258_v25  ;;  %v2375_v28 = vpop.f32.mrb[7].mxu1 }
 0x1cd   :  { %v2856_v27 = vshrl.u32 %v658_v26, 7  ;;  %v464_v28 = vld [vmem:[#allocation2 + $0x30] sm:$0xff] }
 0x1d6   :  { %v2648_v29 = vpop.eup %2647 }
 0x1d7   :  { %265 = vst.msk [vmem:[#allocation3 + $0x8] sm:$0xff] %vm156_vm2, %v2648_v29  ;;  %v266_v30 = vpack.c.bf16 %v2648_v29, %v2648_v29 }
 0x1d9   :  { %2379 = vmatmul.mubr.msk.bf16.vlgmr.msra.gmra.mrb[8].mxu1 %vm156_vm2, %v266_v30 }
 0x1da   :  { %2383 = vmatpush3.bf16.msra.mxu1 %v2776_v8  ;;  %2384 = vmatprep.mubr.msk.bf16.mxu1 %vm2686_vm1, %v2685_v1 }
 0x1db   :  { %2388 = vmatprep.subr.bf16.mxu1 %v2685_v1 }
 0x1de   :  { %v561_v11 = vld [vmem:[#allocation3 + $0x8] sm:$0xff] }
 0x1df   :  { %v568_v14 = vpack.c.bf16 %v561_v11, %v560_v13 }
 0x2ac   :  { %v306_v32 = vpop.f32.mrb[8].mxu1 }
 0x2ad   :  { %v307_v33 = vadd.f32 %v306_v32, %v268_v31  ;;  %v2380_v34 = vpop.f32.mrb[9].mxu1  ;;  %v660_v32 = vsub.s32 0, %v2856_v27 }
 0x2ae   :  { %v309_v35 = vpop.f32.mrb[10].mxu1 }
 0x2af   :  { %2649 = vtanh.f32 %v307_v33  ;;  %v2381_v36 = vpop.f32.mrb[11].mxu1 }
 0x2b9   :  { %v2650_v37 = vpop.eup %2649 }
 0x2ba   :  { %314 = vst.msk [vmem:[#allocation3 + $0x10] sm:$0xff] %vm156_vm2, %v2650_v37  ;;  %v315_v38 = vpack.c.bf16 %v2650_v37, %v2650_v37 }
 0x2bc   :  { %2385 = vmatmul.mubr.msk.bf16.vlgmr.msra.gmra.mrb[12].mxu1 %vm156_vm2, %v315_v38 }
 0x2bd   :  { %2389 = vmatpush3.bf16.msra.mxu1 %v2776_v8  ;;  %2390 = vmatprep.mubr.msk.bf16.mxu1 %vm2686_vm1, %v2685_v1 }
 0x2be   :  { %2400 = vmatprep.subr.bf16.mxu1 %v2685_v1 }
 0x2c1   :  { %v562_v16 = vld [vmem:[#allocation3 + $0x10] sm:$0xff] }
 0x38f   :  { %v355_v46 = vpop.f32.mrb[12].mxu1 }
 0x390   :  { %v356_v47 = vadd.f32 %v355_v46, %v317_v45  ;;  %v2386_v48 = vpop.f32.mrb[13].mxu1 }
 0x391   :  { %v358_v49 = vpop.f32.mrb[14].mxu1  ;;  %v2870_v48 = vld [vmem:[#allocation4 + $0x8] sm:$0xff] }
 0x392   :  { %2651 = vtanh.f32 %v356_v47  ;;  %v2387_v50 = vpop.f32.mrb[15].mxu1  ;;  %v2624_v47 = vld [vmem:[%s3086_s5 + $0x18] sm:$0xff]  }
 0x39c   :  { %v2652_v51 = vpop.eup %2651 }
 0x39d   :  { %363 = vst.msk [vmem:[#allocation3 + $0x18] sm:$0xff] %vm156_vm2, %v2652_v51  ;;  %v364_v52 = vpack.c.bf16 %v2652_v51, %v2652_v51 }
 0x39f   :  { %2391 = vmatmul.mubr.msk.bf16.vlgmr.msra.gmra.mrb[16].mxu1 %vm156_vm2, %v364_v52 }
 0x3a0   :  { %2401 = vmatpush3.bf16.msra.mxu1 %v2776_v8  ;;  %2402 = vmatprep.mubr.msk.bf16.mxu1 %vm2686_vm1, %v2685_v1 }
 0x3a1   :  { %2412 = vmatprep.subr.bf16.mxu1 %v2622_v2 }
 0x3a4   :  { %v563_v15 = vld [vmem:[#allocation3 + $0x18] sm:$0xff] }
 0x3a5   :  { %v569_v19 = vpack.c.bf16 %v563_v15, %v562_v16 }
 0x472   :  { %v404_v58 = vpop.f32.mrb[16].mxu1 }
 0x473   :  { %v405_v59 = vadd.f32 %v404_v58, %v366_v57  ;;  %v2392_v60 = vpop.f32.mrb[17].mxu1 }
 0x474   :  { %v407_v61 = vpop.f32.mrb[18].mxu1 }
 0x475   :  { %2653 = vtanh.f32 %v405_v59  ;;  %v2393_v62 = vpop.f32.mrb[19].mxu1 }
 0x47f   :  { %v2654_v63 = vpop.eup %2653 }
 0x480   :  { %412 = vst.msk [vmem:[#allocation3 + $0x20] sm:$0xff] %vm156_vm2, %v2654_v63  ;;  %v413_v0 = vpack.c.bf16 %v2654_v63, %v2654_v63 }
 0x482   :  { %2397 = vmatmul.mubr.msk.bf16.vlgmr.msra.gmra.mrb[8].mxu0 %vm156_vm2, %v413_v0  ;;  %v2625_v0 = vld [vmem:[%s3086_s5] sm:$0xff]  }
 0x483   :  { %2407 = vmatpush3.bf16.msra.mxu0 %v2776_v8  ;;  %2408 = vmatprep.mubr.msk.bf16.mxu0 %vm2686_vm1, %v2685_v1 }
 0x484   :  { %2422 = vmatprep.subr.bf16.mxu0 %v2623_v21 }
 0x487   :  { %v564_v17 = vld [vmem:[#allocation3 + $0x20] sm:$0xff] }
 0x555   :  { %v453_v4 = vpop.f32.mrb[8].mxu0 }
 0x556   :  { %v454_v5 = vadd.f32 %v453_v4, %v415_v3  ;;  %v2398_v6 = vpop.f32.mrb[9].mxu0  ;;  %v2627_v3 = vld [vmem:[%s3086_s5 + $0x20] sm:$0xff]   ;;  %v2629_v4 = vld [vmem:[%s3082_s2 + $0x10] sm:$0xff]  }
 0x557   :  { %v456_v7 = vpop.f32.mrb[10].mxu0 }
 0x558   :  { %2655 = vtanh.f32 %v454_v5  ;;  %v2399_v9 = vpop.f32.mrb[11].mxu0 }
 0x559   :  { %2657 = vpow2.f32 %v2136_v23  ;;  %v2628_v23 = vld [vmem:[%s3086_s5 + $0x28] sm:$0xff]  }
 0x562   :  { %v2656_v12 = vpop.eup %2655 }
 0x563   :  { %461 = vst.msk [vmem:[#allocation3 + $0x28] sm:$0xff] %vm156_vm2, %v2656_v12  ;;  %v462_v8 = vpack.c.bf16 %v2656_v12, %v2656_v12  ;;  %v2658_v24 = vpop.eup %2657 }
 0x564   :  { %v56_v25 = vadd.f32 1.0, %v2658_v24 }
 0x565   :  { %2403 = vmatmul.mubr.msk.bf16.vlgmr.msra.gmra.mrb[20].mxu1 %vm156_vm2, %v462_v8 }
 0x566   :  { %2414 = vmatprep.mubr.msk.bf16.mxu1 %vm156_vm2, %v568_v14  ;;  %2413 = vmatpush3.bf16.msra.mxu1 %v2622_v2  ;;  %2659 = vrcp.f32 %v56_v25  ;;  %v2626_v2 = vld [vmem:[%s3086_s5 + $0x8] sm:$0xff]   ;;  %v679_v14 = vld [vmem:[#allocation4] sm:$0xff] }
 0x567   :  { %2458 = vmatprep.subr.bf16.mxu1 %v2629_v4 }
 0x56a   :  { %v565_v18 = vld [vmem:[#allocation3 + $0x28] sm:$0xff] }
 0x56b   :  { %v570_v20 = vpack.c.bf16 %v565_v18, %v564_v17 }
 0x56d   :  { %2415 = vmatmul.mubr.msk.bf16.vlgmr.msra.gmra.mrb[24].mxu1 %vm156_vm2, %v569_v19 }
 0x56e   :  { %2418 = vmatprep.mubr.msk.bf16.mxu1 %vm156_vm2, %v570_v20  ;;  %2459 = vmatpush3.bf16.msra.mxu1 %v2629_v4  ;;  %v2894_v20 = vpack.c.bf16 %v2870_v48, %v679_v14 }
 0x570   :  { %v2660_v33 = vpop.eup %2659 }
 0x571   :  { %v661_v36 = vrot.slane %v2660_v33, %v660_v32  ;;  %v2182_v33 = vld [vmem:[%s3088_s6] ss:$0 sm:$0xff] }
 0x638   :  { %v502_v29 = vpop.f32.mrb[20].mxu1 }
 0x639   :  { %v503_v30 = vadd.f32 %v502_v29, %v464_v28  ;;  %v2404_v31 = vpop.f32.mrb[21].mxu1  ;;  %v2630_v29 = vld [vmem:[%s3082_s2 + $0x18] sm:$0xff]  }
 0x63a   :  { %v505_v34 = vpop.f32.mrb[22].mxu1  ;;  %2460 = vmatprep.subr.bf16.mxu1 %v2630_v29 }
 0x63b   :  { %2661 = vtanh.f32 %v503_v30  ;;  %v2405_v35 = vpop.f32.mrb[23].mxu1  ;;  %2461 = vmatpush3.bf16.msra.mxu1 %v2630_v29  ;;  %v2920_v30 = vld [vmem:[%s3084_s1 + $0x8] sm:$0xff]  }
 0x63c   :  { %2470 = vmatprep.subr.bf16.mxu1 %v2685_v1 }
 0x640   :  { %v2416_v37 = vpop.f32.mrb[24].mxu1 }
 0x641   :  { %v665_v38 = vmul.f32 %v2416_v37, %v661_v36  ;;  %v626_v39 = vpop.f32.mrb[25].mxu1 }
 0x642   :  { %v663_v40 = vmul.f32 %v661_v36, %v626_v39  ;;  %v2417_v41 = vpop.f32.mrb[26].mxu1 }
 0x643   :  { %673 = vst.msk [vmem:[#allocation4 + $0x20] sm:$0xff] %vm39_vm0, %v665_v38  ;;  %v666_v42 = vmul.f32 %v2417_v41, %v661_v36  ;;  %v629_v43 = vpop.f32.mrb[27].mxu1 }
 0x644   :  { %671 = vst.msk [vmem:[#allocation4 + $0x10] sm:$0xff] %vm39_vm0, %v663_v40  ;;  %v664_v44 = vmul.f32 %v661_v36, %v629_v43 }
 0x645   :  { %v2662_v45 = vpop.eup %2661  ;;  %674 = vst.msk [vmem:[#allocation4 + $0x28] sm:$0xff] %vm39_vm0, %v666_v42 }
 0x646   :  { %510 = vst.msk [vmem:[#allocation3 + $0x30] sm:$0xff] %vm156_vm2, %v2662_v45  ;;  %v511_v46 = vpack.c.bf16 %v2662_v45, %v2662_v45 }
 0x647   :  { %672 = vst.msk [vmem:[#allocation4 + $0x18] sm:$0xff] %vm39_vm0, %v664_v44 }
 0x648   :  { %2409 = vmatmul.mubr.msk.bf16.vlgmr.msra.gmra.mrb[12].mxu0 %vm156_vm2, %v511_v46 }
 0x649   :  { %2423 = vmatpush3.bf16.msra.mxu0 %v2623_v21 }
 0x64a   :  { %2424 = vmatprep.subr.bf16.mxu0 %v2624_v47  ;;  %v683_v52 = vld [vmem:[#allocation4 + $0x20] sm:$0xff] }
 0x64b   :  { %v681_v49 = vld [vmem:[#allocation4 + $0x10] sm:$0xff] }
 0x64c   :  { %v696_v50 = vpack.c.bf16 %v681_v49, %v2870_v48  ;;  %v684_v15 = vld [vmem:[#allocation4 + $0x28] sm:$0xff] }
 0x64d   :  { %2425 = vmatpush3.bf16.msra.mxu0 %v2624_v47  ;;  %v566_v61 = vld [vmem:[#allocation3 + $0x30] sm:$0xff]  ;;  %v689_v24 = vpack.c.bf16 %v684_v15, %v683_v52 }
 0x64e   :  { %v682_v51 = vld [vmem:[#allocation4 + $0x18] sm:$0xff]  ;;  %2426 = vmatprep.mubr.msk.bf16.mxu0 %vm39_vm0, %v696_v50  ;;  %2434 = vmatprep.subr.bf16.mxu0 %v2625_v0 }
 0x64f   :  { %v697_v53 = vpack.c.bf16 %v683_v52, %v682_v51  ;;  %v688_v22 = vpack.c.bf16 %v682_v51, %v681_v49 }
 0x651   :  { %2427 = vmatmul.mubr.msk.bf16.vlgmr.msra.gmra.mrb[16].mxu0 %vm39_vm0, %v697_v53 }
 0x652   :  { %2435 = vmatpush3.bf16.msra.mxu0 %v2625_v0 }
 0x653   :  { %2436 = vmatprep.subr.bf16.mxu0 %v2626_v2 }
 0x656   :  { %2437 = vmatpush3.bf16.msra.mxu0 %v2626_v2 }
 0x657   :  { %2446 = vmatprep.subr.bf16.mxu0 %v2627_v3 }
 0x71b   :  { %v551_v55 = vpop.f32.mrb[12].mxu0 }
 0x71c   :  { %v552_v56 = vadd.f32 %v551_v55, %v513_v54  ;;  %v2410_v57 = vpop.f32.mrb[13].mxu0 }
 0x71d   :  { %v554_v58 = vpop.f32.mrb[14].mxu0 }
 0x71e   :  { %2663 = vtanh.f32 %v552_v56  ;;  %v2411_v59 = vpop.f32.mrb[15].mxu0 }
 0x728   :  { %v2664_v60 = vpop.eup %2663 }
 0x729   :  { %559 = vst.msk [vmem:[#allocation3 + $0x38] sm:$0xff] %vm156_vm2, %v2664_v60 }
 0x730   :  { %v567_v62 = vld [vmem:[#allocation3 + $0x38] sm:$0xff] }
 0x731   :  { %v571_v63 = vpack.c.bf16 %v567_v62, %v566_v61 }
 0x733   :  { %2419 = vmatmul.mubr.msk.bf16.gmra.mrb[28].mxu1 %vm156_vm2, %v571_v63 }
 0x806   :  { %v2420_v5 = vpop.f32.mrb[28].mxu1 }
 0x807   :  { %v669_v6 = vmul.f32 %v2420_v5, %v661_v36  ;;  %v642_v7 = vpop.f32.mrb[29].mxu1 }
 0x808   :  { %v667_v9 = vmul.f32 %v661_v36, %v642_v7  ;;  %v2421_v11 = vpop.f32.mrb[30].mxu1 }
 0x809   :  { %677 = vst.msk [vmem:[#allocation4 + $0x40] sm:$0xff] %vm39_vm0, %v669_v6  ;;  %v670_v12 = vmul.f32 %v2421_v11, %v661_v36  ;;  %v645_v8 = vpop.f32.mrb[31].mxu1 }
 0x80a   :  { %675 = vst.msk [vmem:[#allocation4 + $0x30] sm:$0xff] %vm39_vm0, %v667_v9  ;;  %v668_v13 = vmul.f32 %v661_v36, %v645_v8 }
 0x80b   :  { %678 = vst.msk [vmem:[#allocation4 + $0x48] sm:$0xff] %vm39_vm0, %v670_v12 }
 0x80c   :  { %676 = vst.msk [vmem:[#allocation4 + $0x38] sm:$0xff] %vm39_vm0, %v668_v13 }
 0x810   :  { %v695_v19 = vld [vmem:[#allocation4 + $0x40] sm:$0xff] }
 0x811   :  { %v685_v16 = vld [vmem:[#allocation4 + $0x30] sm:$0xff] }
 0x812   :  { %v698_v17 = vpack.c.bf16 %v685_v16, %v684_v15  ;;  %v890_v26 = vld [vmem:[#allocation4 + $0x48] sm:$0xff] }
 0x813   :  { %v686_v18 = vld [vmem:[#allocation4 + $0x38] sm:$0xff]  ;;  %v894_v28 = vpack.c.bf16 %v890_v26, %v695_v19 }
 0x814   :  { %2430 = vmatprep.mubr.msk.bf16.mxu0 %vm39_vm0, %v698_v17  ;;  %v699_v21 = vpack.c.bf16 %v695_v19, %v686_v18  ;;  %v690_v25 = vpack.c.bf16 %v686_v18, %v685_v16 }
 0x816   :  { %2431 = vmatmul.mubr.msk.bf16.gmra.mrb[20].mxu0 %vm39_vm0, %v699_v21 }
 0x817   :  { %2438 = vmatprep.mubr.msk.bf16.mxu0 %vm39_vm0, %v2894_v20 }
 0x81e   :  { %2439 = vmatmul.mubr.msk.bf16.vlgmr.msra.gmra.mrb[16].mxu0 %vm39_vm0, %v688_v22 }
 0x81f   :  { %2447 = vmatpush3.bf16.msra.mxu0 %v2627_v3  ;;  %2442 = vmatprep.mubr.msk.bf16.mxu0 %vm39_vm0, %v689_v24 }
 0x820   :  { %2448 = vmatprep.subr.bf16.mxu0 %v2628_v23 }
 0x823   :  { %2449 = vmatpush3.bf16.msra.mxu0 %v2628_v23 }
 0x824   :  { %2488 = vmatprep.subr.bf16.mxu0 %v2685_v1 }
 0x826   :  { %2443 = vmatmul.mubr.msk.bf16.gmra.mrb[20].mxu0 %vm39_vm0, %v690_v25 }
 0x827   :  { %2450 = vmatprep.mubr.msk.bf16.mxu0 %vm39_vm0, %v688_v22 }
 0x82e   :  { %2451 = vmatmul.mubr.msk.bf16.vlgmr.msra.gmra.mrb[16].mxu0 %vm39_vm0, %v689_v24 }
 0x82f   :  { %2454 = vmatprep.mubr.msk.bf16.mxu0 %vm39_vm0, %v690_v25  ;;  %2489 = vmatpush3.bf16.msra.mxu0 %v2920_v30 }
 0x830   :  { %2500 = vmatprep.subr.bf16.mxu0 %v2685_v1 }
 0x836   :  { %2455 = vmatmul.mubr.msk.bf16.gmra.mrb[20].mxu0 %vm39_vm0, %v894_v28 }
 0x837   :  { %2490 = vmatprep.mubr.msk.bf16.mxu0 %vm2686_vm1, %v2685_v1 }
 0x901   :  { %v2452_v31 = vpop.f32.mrb[16].mxu0 }
 0x902   :  { %v958_v34 = vpop.f32.mrb[17].mxu0  ;;  %v1006_v36 = vadd.f32 %v2452_v31, %v2182_v33 }
 0x903   :  { %v2453_v35 = vpop.f32.mrb[18].mxu0  ;;  %v1004_v39 = vadd.f32 %v2182_v33, %v958_v34 }
 0x904   :  { %v1007_v37 = vadd.f32 %v2453_v35, %v2182_v33  ;;  %v961_v38 = vpop.f32.mrb[19].mxu0 }
 0x905   :  { %v1005_v40 = vadd.f32 %v2182_v33, %v961_v38 }
 0x906   :  { %v1024_v41 = vpack.c.bf16 %v1007_v37, %v1006_v36 }
 0x907   :  { %v1023_v42 = vpack.c.bf16 %v1005_v40, %v1004_v39 }
 0x909   :  { %v2456_v43 = vpop.f32.mrb[20].mxu0  ;;  %2462 = vmatprep.mubr.msk.bf16.mxu1 %vm39_vm0, %v1023_v42 }
 0x90a   :  { %v974_v44 = vpop.f32.mrb[21].mxu0  ;;  %2463 = vmatmul.mubr.msk.bf16.vlgmr.msra.gmra.mrb[32].mxu1 %vm39_vm0, %v1024_v41  ;;  %v1010_v46 = vadd.f32 %v2456_v43, %v2182_v33  ;;  %v2632_v43 = vld [vmem:[%s3085_s3 + $0x8] sm:$0xff]  }
 0x90b   :  { %2471 = vmatpush3.bf16.msra.mxu1 %v2920_v30  ;;  %v2457_v45 = vpop.f32.mrb[22].mxu0  ;;  %v1008_v50 = vadd.f32 %v2182_v33, %v974_v44 }
 0x90c   :  { %v1011_v47 = vadd.f32 %v2457_v45, %v2182_v33  ;;  %v977_v49 = vpop.f32.mrb[23].mxu0  ;;  %2476 = vmatprep.subr.bf16.mxu1 %v2685_v1 }
 0x90d   :  { %v1009_v51 = vadd.f32 %v2182_v33, %v977_v49 }
 0x90e   :  { %v1026_v52 = vpack.c.bf16 %v1011_v47, %v1010_v46 }
 0x90f   :  { %v1025_v53 = vpack.c.bf16 %v1009_v51, %v1008_v50 }
 0x911   :  { %2466 = vmatprep.mubr.msk.bf16.mxu1 %vm39_vm0, %v1025_v53 }
 0x912   :  { %2467 = vmatmul.mubr.msk.bf16.gmra.mrb[36].mxu1 %vm39_vm0, %v1026_v52 }
 0x913   :  { %2472 = vmatprep.mubr.msk.bf16.mxu1 %vm2686_vm1, %v2685_v1 }
 0x91a   :  { %2473 = vmatmul.mubr.bf16.vlgmr.msra.gmra.mrb[40].mxu1 %v2687_v10 }
 0x91b   :  { %2477 = vmatpush3.bf16.msra.mxu1 %v2920_v30  ;;  %2478 = vmatprep.mubr.msk.bf16.mxu1 %vm2686_vm1, %v2685_v1 }
 0x91c   :  { %2482 = vmatprep.subr.bf16.mxu1 %v2685_v1 }
 0x9dd   :  { %v2464_v54 = vpop.f32.mrb[32].mxu1 }
 0x9de   :  { %1123 = vst.msk [vmem:[#allocation2 + $0x10] sm:$0xff] %vm156_vm2, %v2464_v54  ;;  %v1090_v55 = vpop.f32.mrb[33].mxu1 }
 0x9df   :  { %1121 = vst.msk [vmem:[#allocation2] sm:$0xff] %vm156_vm2, %v1090_v55  ;;  %v2465_v56 = vpop.f32.mrb[34].mxu1 }
 0x9e0   :  { %1124 = vst.msk [vmem:[#allocation2 + $0x18] sm:$0xff] %vm156_vm2, %v2465_v56  ;;  %v1093_v57 = vpop.f32.mrb[35].mxu1 }
 0x9e1   :  { %1122 = vst.msk [vmem:[#allocation2 + $0x8] sm:$0xff] %vm156_vm2, %v1093_v57 }
 0x9e5   :  { %v2468_v10 = vpop.f32.mrb[36].mxu1  ;;  %v1226_v15 = vld [vmem:[#allocation2 + $0x10] sm:$0xff] }
 0x9e6   :  { %1127 = vst.msk [vmem:[#allocation2 + $0x30] sm:$0xff] %vm156_vm2, %v2468_v10  ;;  %v1106_v58 = vpop.f32.mrb[37].mxu1  ;;  %v1129_v61 = vld [vmem:[#allocation2] sm:$0xff] }
 0x9e7   :  { %1125 = vst.msk [vmem:[#allocation2 + $0x20] sm:$0xff] %vm156_vm2, %v1106_v58  ;;  %v2469_v59 = vpop.f32.mrb[38].mxu1  ;;  %v1273_v24 = vld [vmem:[#allocation2 + $0x18] sm:$0xff] }
 0x9e8   :  { %1128 = vst.msk [vmem:[#allocation2 + $0x38] sm:$0xff] %vm156_vm2, %v2469_v59  ;;  %v1109_v60 = vpop.f32.mrb[39].mxu1  ;;  %v1179_v6 = vld [vmem:[#allocation2 + $0x8] sm:$0xff] }
 0x9e9   :  { %1126 = vst.msk [vmem:[#allocation2 + $0x28] sm:$0xff] %vm156_vm2, %v1109_v60  ;;  %v2633_v60 = vld [vmem:[%s3086_s5 + $0x40] sm:$0xff]  }
 0x9ed   :  { %v1170_v62 = vpop.f32.mrb[40].mxu1 }
 0x9ee   :  { %v1171_v63 = vadd.f32 %v1170_v62, %v1129_v61  ;;  %v2474_v0 = vpop.f32.mrb[41].mxu1  ;;  %v1320_v35 = vld [vmem:[#allocation2 + $0x20] sm:$0xff] }
 0x9ef   :  { %v1173_v2 = vpop.f32.mrb[42].mxu1  ;;  %v2185_v61 = vld [vmem:[%s3087_s4 + $0x1] sm:$0x1] }
 0x9f0   :  { %2665 = vtanh.f32 %v1171_v63  ;;  %v2475_v3 = vpop.f32.mrb[43].mxu1  ;;  %v1367_v44 = vld [vmem:[#allocation2 + $0x28] sm:$0xff]  ;;  %v2186_v62 = vmul.f32 -1.442695, %v2185_v61  ;;  %v1414_v2 = vld [vmem:[#allocation2 + $0x30] sm:$0xff] }
 0x9f1   :  { %v2243_v61 = vld [vmem:[%s3088_s6 + $0x1] ss:$0 sm:$0xff] }
 0x9fa   :  { %v2666_v4 = vpop.eup %2665 }
 0x9fb   :  { %1177 = vst.msk [vmem:[#allocation3] sm:$0xff] %vm156_vm2, %v2666_v4  ;;  %v1178_v5 = vpack.c.bf16 %v2666_v4, %v2666_v4 }
 0x9fd   :  { %2479 = vmatmul.mubr.msk.bf16.vlgmr.msra.gmra.mrb[44].mxu1 %vm156_vm2, %v1178_v5 }
 0x9fe   :  { %2483 = vmatpush3.bf16.msra.mxu1 %v2920_v30  ;;  %2484 = vmatprep.mubr.msk.bf16.mxu1 %vm2686_vm1, %v2685_v1 }
 0x9ff   :  { %2494 = vmatprep.subr.bf16.mxu1 %v2685_v1 }
 0xa02   :  { %v1507_v53 = vld [vmem:[#allocation3] sm:$0xff] }
 0xad0   :  { %v1217_v7 = vpop.f32.mrb[44].mxu1 }
 0xad1   :  { %v1218_v9 = vadd.f32 %v1217_v7, %v1179_v6  ;;  %v2480_v11 = vpop.f32.mrb[45].mxu1 }
 0xad2   :  { %v1220_v12 = vpop.f32.mrb[46].mxu1 }
 0xad3   :  { %2667 = vtanh.f32 %v1218_v9  ;;  %v2481_v8 = vpop.f32.mrb[47].mxu1 }
 0xadd   :  { %v2668_v13 = vpop.eup %2667 }
 0xade   :  { %1224 = vst.msk [vmem:[#allocation3 + $0x8] sm:$0xff] %vm156_vm2, %v2668_v13  ;;  %v1225_v14 = vpack.c.bf16 %v2668_v13, %v2668_v13 }
 0xae0   :  { %2485 = vmatmul.mubr.msk.bf16.vlgmr.msra.gmra.mrb[48].mxu1 %vm156_vm2, %v1225_v14 }
 0xae1   :  { %2495 = vmatpush3.bf16.msra.mxu1 %v2920_v30  ;;  %2496 = vmatprep.mubr.msk.bf16.mxu1 %vm2686_vm1, %v2685_v1 }
 0xae2   :  { %2506 = vmatprep.subr.bf16.mxu1 %v2685_v1 }
 0xae5   :  { %v1508_v51 = vld [vmem:[#allocation3 + $0x8] sm:$0xff] }
 0xae6   :  { %v1515_v54 = vpack.c.bf16 %v1508_v51, %v1507_v53 }
 0xbb3   :  { %v1264_v16 = vpop.f32.mrb[48].mxu1 }
 0xbb4   :  { %v1265_v17 = vadd.f32 %v1264_v16, %v1226_v15  ;;  %v2486_v18 = vpop.f32.mrb[49].mxu1 }
 0xbb5   :  { %v1267_v19 = vpop.f32.mrb[50].mxu1 }
 0xbb6   :  { %2669 = vtanh.f32 %v1265_v17  ;;  %v2487_v21 = vpop.f32.mrb[51].mxu1 }
 0xbc0   :  { %v2670_v22 = vpop.eup %2669 }
 0xbc1   :  { %v1272_v23 = vpack.c.bf16 %v2670_v22, %v2670_v22  ;;  %1271 = vst.msk [vmem:[#allocation3 + $0x10] sm:$0xff] %vm156_vm2, %v2670_v22 }
 0xbc3   :  { %2491 = vmatmul.mubr.msk.bf16.vlgmr.msra.gmra.mrb[24].mxu0 %vm156_vm2, %v1272_v23 }
 0xbc4   :  { %2501 = vmatpush3.bf16.msra.mxu0 %v2920_v30  ;;  %2502 = vmatprep.mubr.msk.bf16.mxu0 %vm2686_vm1, %v2685_v1 }
 0xbc5   :  { %2512 = vmatprep.subr.bf16.mxu0 %v2685_v1 }
 0xbc8   :  { %v1509_v56 = vld [vmem:[#allocation3 + $0x10] sm:$0xff] }
 0xc96   :  { %v1311_v25 = vpop.f32.mrb[24].mxu0 }
 0xc97   :  { %v1312_v26 = vadd.f32 %v1311_v25, %v1273_v24  ;;  %v2492_v28 = vpop.f32.mrb[25].mxu0 }
 0xc98   :  { %v1314_v29 = vpop.f32.mrb[26].mxu0  ;;  %v1461_v28 = vld [vmem:[#allocation2 + $0x38] sm:$0xff] }
 0xc99   :  { %2671 = vtanh.f32 %v1312_v26  ;;  %v2493_v31 = vpop.f32.mrb[27].mxu0 }
 0xca3   :  { %v2672_v33 = vpop.eup %2671 }
 0xca4   :  { %1318 = vst.msk [vmem:[#allocation3 + $0x18] sm:$0xff] %vm156_vm2, %v2672_v33  ;;  %v1319_v34 = vpack.c.bf16 %v2672_v33, %v2672_v33 }
 0xca6   :  { %2497 = vmatmul.mubr.msk.bf16.vlgmr.msra.gmra.mrb[52].mxu1 %vm156_vm2, %v1319_v34 }
 0xca7   :  { %2507 = vmatpush3.bf16.msra.mxu1 %v2920_v30  ;;  %2508 = vmatprep.mubr.msk.bf16.mxu1 %vm2686_vm1, %v2685_v1 }
 0xca8   :  { %2518 = vmatprep.subr.bf16.mxu1 %v2632_v43 }
 0xcab   :  { %v1510_v55 = vld [vmem:[#allocation3 + $0x18] sm:$0xff] }
 0xcac   :  { %v1516_v58 = vpack.c.bf16 %v1510_v55, %v1509_v56  ;;  %v2638_v56 = vld [vmem:[%s3086_s5 + $0x58] sm:$0xff]  }
 0xd79   :  { %v1358_v36 = vpop.f32.mrb[52].mxu1 }
 0xd7a   :  { %v1359_v37 = vadd.f32 %v1358_v36, %v1320_v35  ;;  %v2498_v38 = vpop.f32.mrb[53].mxu1 }
 0xd7b   :  { %v1361_v39 = vpop.f32.mrb[54].mxu1 }
 0xd7c   :  { %2673 = vtanh.f32 %v1359_v37  ;;  %v2499_v40 = vpop.f32.mrb[55].mxu1  ;;  %v2635_v39 = vld [vmem:[%s3086_s5 + $0x30] sm:$0xff]  }
 0xd7d   :  { %v2636_v40 = vld [vmem:[%s3086_s5 + $0x38] sm:$0xff]  }
 0xd86   :  { %v2674_v41 = vpop.eup %2673 }
 0xd87   :  { %1365 = vst.msk [vmem:[#allocation3 + $0x20] sm:$0xff] %vm156_vm2, %v2674_v41  ;;  %v1366_v42 = vpack.c.bf16 %v2674_v41, %v2674_v41  ;;  %v2637_v41 = vld [vmem:[%s3086_s5 + $0x50] sm:$0xff]  }
 0xd89   :  { %2503 = vmatmul.mubr.msk.bf16.vlgmr.msra.gmra.mrb[28].mxu0 %vm156_vm2, %v1366_v42 }
 0xd8a   :  { %2513 = vmatpush3.bf16.msra.mxu0 %v2920_v30  ;;  %2514 = vmatprep.mubr.msk.bf16.mxu0 %vm2686_vm1, %v2685_v1 }
 0xd8b   :  { %2528 = vmatprep.subr.bf16.mxu0 %v2633_v60 }
 0xd8e   :  { %v1511_v57 = vld [vmem:[#allocation3 + $0x20] sm:$0xff] }
 0xe5c   :  { %v1405_v45 = vpop.f32.mrb[28].mxu0 }
 0xe5d   :  { %v1406_v46 = vadd.f32 %v1405_v45, %v1367_v44  ;;  %v2504_v47 = vpop.f32.mrb[29].mxu0 }
 0xe5e   :  { %v1408_v49 = vpop.f32.mrb[30].mxu0 }
 0xe5f   :  { %2675 = vtanh.f32 %v1406_v46  ;;  %v2505_v50 = vpop.f32.mrb[31].mxu0 }
 0xe60   :  { %2677 = vpow2.f32 %v2186_v62 }
 0xe69   :  { %v2676_v52 = vpop.eup %2675 }
 0xe6a   :  { %1412 = vst.msk [vmem:[#allocation3 + $0x28] sm:$0xff] %vm156_vm2, %v2676_v52  ;;  %v1413_v30 = vpack.c.bf16 %v2676_v52, %v2676_v52  ;;  %v2678_v63 = vpop.eup %2677 }
 0xe6b   :  { %v1020_v0 = vadd.f32 1.0, %v2678_v63 }
 0xe6c   :  { %2509 = vmatmul.mubr.msk.bf16.vlgmr.msra.gmra.mrb[56].mxu1 %vm156_vm2, %v1413_v30 }
 0xe6d   :  { %2520 = vmatprep.mubr.msk.bf16.mxu1 %vm156_vm2, %v1515_v54  ;;  %2519 = vmatpush3.bf16.msra.mxu1 %v2632_v43  ;;  %2679 = vrcp.f32 %v1020_v0 }
 0xe6e   :  { %2564 = vmatprep.subr.bf16.mxu1 %v2685_v1 }
 0xe71   :  { %v1512_v10 = vld [vmem:[#allocation3 + $0x28] sm:$0xff] }
 0xe72   :  { %v1517_v59 = vpack.c.bf16 %v1512_v10, %v1511_v57 }
 0xe74   :  { %2521 = vmatmul.mubr.msk.bf16.vlgmr.msra.gmra.mrb[60].mxu1 %vm156_vm2, %v1516_v58 }
 0xe75   :  { %2524 = vmatprep.mubr.msk.bf16.mxu1 %vm156_vm2, %v1517_v59  ;;  %v2639_v59 = vld [vmem:[%s3089_s7] sm:$0xff]  }
 0xe76   :  { %2565 = vmatpush3.bf16.msra.mxu1 %v2639_v59 }
 0xe77   :  { %v2680_v6 = vpop.eup %2679  ;;  %2566 = vmatprep.subr.bf16.mxu1 %v2685_v1 }
 0xe78   :  { %v1609_v11 = vrot.slane %v2680_v6, %v660_v32  ;;  %v2634_v32 = vld [vmem:[%s3086_s5 + $0x48] sm:$0xff]  }
 0xf3f   :  { %v1452_v3 = vpop.f32.mrb[56].mxu1 }
 0xf40   :  { %v1453_v4 = vadd.f32 %v1452_v3, %v1414_v2  ;;  %v2510_v5 = vpop.f32.mrb[57].mxu1 }
 0xf41   :  { %v1455_v7 = vpop.f32.mrb[58].mxu1 }
 0xf42   :  { %2681 = vtanh.f32 %v1453_v4  ;;  %v2511_v9 = vpop.f32.mrb[59].mxu1 }
 0xf47   :  { %v2522_v12 = vpop.f32.mrb[60].mxu1 }
 0xf48   :  { %v1613_v8 = vmul.f32 %v2522_v12, %v1609_v11  ;;  %v1574_v13 = vpop.f32.mrb[61].mxu1 }
 0xf49   :  { %v1611_v14 = vmul.f32 %v1609_v11, %v1574_v13  ;;  %v2523_v15 = vpop.f32.mrb[62].mxu1 }
 0xf4a   :  { %1621 = vst.msk [vmem:[#allocation4 + $0x20] sm:$0xff] %vm39_vm0, %v1613_v8  ;;  %v1614_v16 = vmul.f32 %v2523_v15, %v1609_v11  ;;  %v1577_v17 = vpop.f32.mrb[63].mxu1 }
 0xf4b   :  { %1619 = vst.msk [vmem:[#allocation4 + $0x10] sm:$0xff] %vm39_vm0, %v1611_v14  ;;  %v1612_v18 = vmul.f32 %v1609_v11, %v1577_v17 }
 0xf4c   :  { %v2682_v19 = vpop.eup %2681  ;;  %1622 = vst.msk [vmem:[#allocation4 + $0x28] sm:$0xff] %vm39_vm0, %v1614_v16 }
 0xf4d   :  { %1459 = vst.msk [vmem:[#allocation3 + $0x30] sm:$0xff] %vm156_vm2, %v2682_v19  ;;  %v1460_v27 = vpack.c.bf16 %v2682_v19, %v2682_v19 }
 0xf4e   :  { %1620 = vst.msk [vmem:[#allocation4 + $0x18] sm:$0xff] %vm39_vm0, %v1612_v18 }
 0xf4f   :  { %2515 = vmatmul.mubr.msk.bf16.vlgmr.msra.gmra.mrb[32].mxu0 %vm156_vm2, %v1460_v27 }
 0xf50   :  { %2529 = vmatpush3.bf16.msra.mxu0 %v2633_v60  ;;  %v2640_v60 = vld [vmem:[%s3089_s7 + $0x8] sm:$0xff]  }
 0xf51   :  { %2530 = vmatprep.subr.bf16.mxu0 %v2634_v32  ;;  %v1631_v24 = vld [vmem:[#allocation4 + $0x20] sm:$0xff]  ;;  %2567 = vmatpush3.bf16.msra.mxu1 %v2640_v60 }
 0xf52   :  { %v1629_v21 = vld [vmem:[#allocation4 + $0x10] sm:$0xff]  ;;  %2572 = vmatprep.subr.bf16.mxu1 %v2685_v1 }
 0xf53   :  { %v1645_v22 = vpack.c.bf16 %v1629_v21, %v2870_v48  ;;  %v1632_v51 = vld [vmem:[#allocation4 + $0x28] sm:$0xff] }
 0xf54   :  { %2531 = vmatpush3.bf16.msra.mxu0 %v2634_v32  ;;  %v1513_v48 = vld [vmem:[#allocation3 + $0x30] sm:$0xff]  ;;  %v1637_v57 = vpack.c.bf16 %v1632_v51, %v1631_v24 }
 0xf55   :  { %v1630_v23 = vld [vmem:[#allocation4 + $0x18] sm:$0xff]  ;;  %2532 = vmatprep.mubr.msk.bf16.mxu0 %vm39_vm0, %v1645_v22  ;;  %2540 = vmatprep.subr.bf16.mxu0 %v2635_v39 }
 0xf56   :  { %v1636_v25 = vpack.c.bf16 %v1630_v23, %v1629_v21  ;;  %v1646_v26 = vpack.c.bf16 %v1631_v24, %v1630_v23 }
 0xf58   :  { %2533 = vmatmul.mubr.msk.bf16.vlgmr.msra.gmra.mrb[36].mxu0 %vm39_vm0, %v1646_v26 }
 0xf59   :  { %2541 = vmatpush3.bf16.msra.mxu0 %v2635_v39 }
 0xf5a   :  { %2542 = vmatprep.subr.bf16.mxu0 %v2636_v40 }
 0xf5d   :  { %2543 = vmatpush3.bf16.msra.mxu0 %v2636_v40 }
 0xf5e   :  { %2552 = vmatprep.subr.bf16.mxu0 %v2637_v41 }
0x1022   :  { %v1499_v29 = vpop.f32.mrb[32].mxu0 }
0x1023   :  { %v1500_v31 = vadd.f32 %v1499_v29, %v1461_v28  ;;  %v2516_v33 = vpop.f32.mrb[33].mxu0 }
0x1024   :  { %v1502_v34 = vpop.f32.mrb[34].mxu0 }
0x1025   :  { %2683 = vtanh.f32 %v1500_v31  ;;  %v2517_v35 = vpop.f32.mrb[35].mxu0  ;;  %v2641_v34 = vld [vmem:[%s3090_s9] sm:$0xff]  }
0x102f   :  { %v2684_v36 = vpop.eup %2683 }
0x1030   :  { %1506 = vst.msk [vmem:[#allocation3 + $0x38] sm:$0xff] %vm156_vm2, %v2684_v36  ;;  %v2642_v36 = vld [vmem:[%s3090_s9 + $0x8] sm:$0xff]  }
0x1037   :  { %v1514_v37 = vld [vmem:[#allocation3 + $0x38] sm:$0xff] }
0x1038   :  { %v1518_v38 = vpack.c.bf16 %v1514_v37, %v1513_v48  ;;  %v2643_v48 = vld [vmem:[%s3090_s9 + $0x10] sm:$0xff]   ;;  %v2644_v37 = vld [vmem:[%s3090_s9 + $0x18] sm:$0xff]  }
0x103a   :  { %2525 = vmatmul.mubr.msk.bf16.gmra.mrb[64].mxu1 %vm156_vm2, %v1518_v38  ;;  %v2244_v38 = vld [vmem:[%s3091_s8] ss:$0 sm:$0xff] }
0x103b   :  { %2568 = vmatprep.mubr.msk.bf16.mxu1 %vm2686_vm1, %v2685_v1 }
0x110d   :  { %v2526_v42 = vpop.f32.mrb[64].mxu1 }
0x110e   :  { %v1617_v43 = vmul.f32 %v2526_v42, %v1609_v11  ;;  %v1590_v44 = vpop.f32.mrb[65].mxu1 }
0x110f   :  { %v1615_v45 = vmul.f32 %v1609_v11, %v1590_v44  ;;  %v2527_v46 = vpop.f32.mrb[66].mxu1 }
0x1110   :  { %1625 = vst.msk [vmem:[#allocation4 + $0x40] sm:$0xff] %vm39_vm0, %v1617_v43  ;;  %v1618_v47 = vmul.f32 %v2527_v46, %v1609_v11  ;;  %v1593_v49 = vpop.f32.mrb[67].mxu1 }
0x1111   :  { %1623 = vst.msk [vmem:[#allocation4 + $0x30] sm:$0xff] %vm39_vm0, %v1615_v45  ;;  %v1616_v50 = vmul.f32 %v1609_v11, %v1593_v49 }
0x1112   :  { %1626 = vst.msk [vmem:[#allocation4 + $0x48] sm:$0xff] %vm39_vm0, %v1618_v47 }
0x1113   :  { %1624 = vst.msk [vmem:[#allocation4 + $0x38] sm:$0xff] %vm39_vm0, %v1616_v50 }
0x1117   :  { %v1644_v54 = vld [vmem:[#allocation4 + $0x40] sm:$0xff] }
0x1118   :  { %v1633_v52 = vld [vmem:[#allocation4 + $0x30] sm:$0xff] }
0x1119   :  { %v1647_v30 = vpack.c.bf16 %v1633_v52, %v1632_v51 }
0x111a   :  { %v1634_v53 = vld [vmem:[#allocation4 + $0x38] sm:$0xff] }
0x111b   :  { %2536 = vmatprep.mubr.msk.bf16.mxu0 %vm39_vm0, %v1647_v30  ;;  %v1648_v55 = vpack.c.bf16 %v1644_v54, %v1634_v53  ;;  %v1638_v10 = vpack.c.bf16 %v1634_v53, %v1633_v52 }
0x111d   :  { %2537 = vmatmul.mubr.msk.bf16.gmra.mrb[40].mxu0 %vm39_vm0, %v1648_v55 }
0x111e   :  { %2544 = vmatprep.mubr.msk.bf16.mxu0 %vm39_vm0, %v2894_v20  ;;  %v1839_v20 = vld [vmem:[#allocation4 + $0x48] sm:$0xff] }
0x111f   :  { %v1843_v58 = vpack.c.bf16 %v1839_v20, %v1644_v54 }
0x1125   :  { %2545 = vmatmul.mubr.msk.bf16.vlgmr.msra.gmra.mrb[36].mxu0 %vm39_vm0, %v1636_v25 }
0x1126   :  { %2553 = vmatpush3.bf16.msra.mxu0 %v2637_v41  ;;  %2548 = vmatprep.mubr.msk.bf16.mxu0 %vm39_vm0, %v1637_v57 }
0x1127   :  { %2554 = vmatprep.subr.bf16.mxu0 %v2638_v56 }
0x112a   :  { %2555 = vmatpush3.bf16.msra.mxu0 %v2638_v56 }
0x112d   :  { %2549 = vmatmul.mubr.msk.bf16.gmra.mrb[40].mxu0 %vm39_vm0, %v1638_v10 }
0x112e   :  { %2556 = vmatprep.mubr.msk.bf16.mxu0 %vm39_vm0, %v1636_v25 }
0x1135   :  { %2557 = vmatmul.mubr.msk.bf16.vlgmr.msra.gmra.mrb[36].mxu0 %vm39_vm0, %v1637_v57 }
0x1136   :  { %2560 = vmatprep.mubr.msk.bf16.mxu0 %vm39_vm0, %v1638_v10 }
0x113d   :  { %2561 = vmatmul.mubr.msk.bf16.gmra.mrb[40].mxu0 %vm39_vm0, %v1843_v58 }
0x1208   :  { %v2558_v62 = vpop.f32.mrb[36].mxu0 }
0x1209   :  { %v1907_v63 = vpop.f32.mrb[37].mxu0  ;;  %v1956_v4 = vadd.f32 %v2558_v62, %v2243_v61 }
0x120a   :  { %v1954_v0 = vadd.f32 %v2243_v61, %v1907_v63  ;;  %v2559_v2 = vpop.f32.mrb[38].mxu0 }
0x120b   :  { %v1910_v3 = vpop.f32.mrb[39].mxu0  ;;  %v1957_v7 = vadd.f32 %v2559_v2, %v2243_v61  ;;  %v1965_v12 = vsel %vm39_vm0, %v1956_v4, 0.0 }
0x120c   :  { %v1955_v5 = vadd.f32 %v2243_v61, %v1910_v3  ;;  %v1962_v6 = vsel %vm39_vm0, %v1954_v0, 0.0 }
0x120d   :  { %v1967_v15 = vsel %vm39_vm0, %v1957_v7, 0.0 }
0x120e   :  { %v1963_v9 = vsel %vm39_vm0, %v1955_v5, 0.0 }
0x120f   :  { %v1964_v11 = vadd.f32 %v1963_v9, %v1962_v6 }
0x1210   :  { %v2562_v8 = vpop.f32.mrb[40].mxu0 }
0x1211   :  { %v1966_v13 = vadd.f32 %v1965_v12, %v1964_v11  ;;  %v1923_v14 = vpop.f32.mrb[41].mxu0  ;;  %v1960_v27 = vadd.f32 %v2562_v8, %v2243_v61 }
0x1212   :  { %v1958_v16 = vadd.f32 %v2243_v61, %v1923_v14  ;;  %v2563_v17 = vpop.f32.mrb[42].mxu0 }
0x1213   :  { %v1968_v18 = vadd.f32 %v1967_v15, %v1966_v13  ;;  %v1926_v19 = vpop.f32.mrb[43].mxu0  ;;  %v1961_v23 = vadd.f32 %v2563_v17, %v2243_v61  ;;  %v1973_v26 = vsel %vm39_vm0, %v1960_v27, 0.0 }
0x1214   :  { %v1969_v32 = vsel %vm39_vm0, %v1958_v16, 0.0  ;;  %v1959_v21 = vadd.f32 %v2243_v61, %v1926_v19 }
0x1215   :  { %v1970_v22 = vadd.f32 %v1969_v32, %v1968_v18  ;;  %v1975_v29 = vsel %vm39_vm0, %v1961_v23, 0.0 }
0x1216   :  { %v1971_v24 = vsel %vm39_vm0, %v1959_v21, 0.0 }
0x1217   :  { %v1972_v25 = vadd.f32 %v1971_v24, %v1970_v22 }
0x1219   :  { %v1974_v28 = vadd.f32 %v1973_v26, %v1972_v25 }
0x121b   :  { %v1976_v31 = vadd.f32 %v1975_v29, %v1974_v28 }
0x121d   :  { %v1977_v33 = vmul.f32 0.125, %v1976_v31 }
0x121f   :  { %v1978_v35 = vpack.c.bf16 %v1977_v33, %v1977_v33 }
0x1221   :  { %2569 = vmatmul.mubr.msk.bf16.vlgmr.msra.gmra.mrb[68].mxu1 %vm39_vm0, %v1978_v35 }
0x1222   :  { %2573 = vmatpush3.bf16.msra.mxu1 %v2641_v34  ;;  %2580 = vmatprep.mubr.msk.bf16.mxu1 %vm2686_vm1, %v2685_v1 }
0x1223   :  { %2574 = vmatprep.subr.bf16.mxu1 %v2685_v1 }
0x1226   :  { %2575 = vmatpush3.bf16.msra.mxu1 %v2642_v36 }
0x1227   :  { %2576 = vmatprep.subr.bf16.mxu1 %v2685_v1 }
0x122a   :  { %2577 = vmatpush3.bf16.msra.mxu1 %v2643_v48 }
0x122b   :  { %2578 = vmatprep.subr.bf16.mxu1 %v2685_v1  ;;  %v2248_v1 = vld [vmem:[%s3092_s10] ss:$0 sm:$0xff] }
0x122e   :  { %2579 = vmatpush3.bf16.msra.mxu1 %v2644_v37 }
0x12f4   :  { %v2039_v39 = vpop.f32.mrb[68].mxu1 }
0x12f5   :  { %v2040_v40 = vadd.f32 %v2244_v38, %v2039_v39  ;;  %v2570_v41 = vpop.f32.mrb[69].mxu1 }
0x12f6   :  { %v2042_v42 = vpop.f32.mrb[70].mxu1 }
0x12f7   :  { %v2045_v43 = vmax.f32 %v2040_v40, 0.0  ;;  %v2571_v44 = vpop.f32.mrb[71].mxu1 }
0x12f9   :  { %v2046_v45 = vpack.c.bf16 %v2045_v43, %v2045_v43 }
0x12fb   :  { %2581 = vmatmul.mubr.msk.bf16.vlgmr.msra.gmra.mrb[72].mxu1 %vm2086_vm3, %v2046_v45 }
0x13ce   :  { %v2124_v46 = vpop.f32.mrb[72].mxu1 }
0x13cf   :  { %v2125_v47 = vadd.f32 %v2248_v1, %v2124_v46  ;;  %v2582_v49 = vpop.f32.mrb[73].mxu1 }
0x13d0   :  { %v2127_v50 = vpop.f32.mrb[74].mxu1 }
0x13d1   :  { %2131 = vst.msk [vmem:[%s3093_s11] sm:$0xff] %vm2130_vm4, %v2125_v47  ;;  %v2583_v51 = vpop.f32.mrb[75].mxu1 }

</bundles_post_ra>
